<compile_context>
chip_gen: v7x
topology: tpu7x:2x2x1
jax: 0.10.0
libtpu: 0.0.40
codegen_flags: <defaults>
</compile_context>

<pallas_src>
import numpy as np
import jax
import jax.numpy as jnp
from jax.experimental import pallas as pl
from jax.experimental.pallas import tpu as pltpu


# ---------------- synthetic task / model configuration ----------------
class Args:
    skill_dim = 4
    vq_skill = False
    entity_embed_dim = 32
    attn_embed_dim = 16
    head = 2
    depth = 2
    id_length = 4
    max_agent = 8
    num_stack_frames = 1
    mixing_embed_dim = 32


ARGS = Args()

OBS_OWN_DIM = 10
OBS_NF_EN = 6
OBS_NF_AL = 5
N_AGENTS = 4
N_ENEMIES = 3
N_ALLIES = N_AGENTS - 1
N_ACTIONS_NO_ATTACK = 6
LAST_ACTION_SHAPE = N_ACTIONS_NO_ATTACK + N_ENEMIES
OBS_DIM = OBS_OWN_DIM + N_ENEMIES * OBS_NF_EN + N_ALLIES * OBS_NF_AL

E = ARGS.entity_embed_dim          # 32
H = ARGS.head                      # 2
DEPTH = ARGS.depth                 # 2
FF = 4 * E                         # 128 (UPDeT ff_hidden_mult = 4)

WRAPPED_OWN_DIM = OBS_OWN_DIM + ARGS.id_length + N_ACTIONS_NO_ATTACK + 1   # 21
EN_DIM = OBS_NF_EN + 1                                                     # 7
AL_DIM = OBS_NF_AL                                                         # 5
N_TOKENS = 1 + N_ENEMIES + N_ALLIES + 1                                    # 8

# ---- packed (lane-dense) layouts ----
F_PAD = 128                                   # activation-slab width
OWN_OFF = 0                                   # own features        [0, 21)
EN_OFF = OWN_OFF + WRAPPED_OWN_DIM            # enemy features      [21, 28)
AL_OFF = EN_OFF + EN_DIM                      # ally features       [28, 33)
HID_OFF = AL_OFF + AL_DIM                     # history hidden      [33, 65)
TYPE_OFF = HID_OFF + E                        # one-hot token type  [65, 69)  (folded biases)
assert TYPE_OFF + 4 <= F_PAD

OUT_PAD = 128                                 # lane-dense padded kernel output width
NEG_INF = -1e9


def _bf16_softmax_ok():
    """bf16 softmax slab only where the VPU/EUP are bf16-capable (v6e/v7x)."""
    try:
        kind = jax.devices()[0].device_kind.lower()
    except Exception:
        return False
    return any(tag in kind for tag in ("v6", "v7"))


SOFTMAX_BF16 = _bf16_softmax_ok()


# ---------------------------- shared math ----------------------------
def _layer_norm(x, g, b, eps=1e-5):
    mu = jnp.mean(x, axis=-1, keepdims=True)
    var = jnp.mean(jnp.square(x - mu), axis=-1, keepdims=True)
    return (x - mu) * jax.lax.rsqrt(var + eps) * g + b


# ---------------------------- Pallas kernel ----------------------------
def planner_kernel(feat_ref, bias_ref, w_enc_ref, w_qkv_ref, w_ff1_ref, w_ff2_ref,
                   vec_ref, w_out_ref, b_out_ref, out_ref):
    f32 = jnp.float32
    bf16 = jnp.bfloat16

    # block-diagonal attention bias (built once on the host, resident in VMEM)
    attn_bias = bias_ref[...]                                    # (blk, blk) f32

    # fused entity encoders + token embedding: ONE block-diagonal matmul
    #   (blk, 128) x (128, E) -> (blk, E); encoder/token biases folded in via the
    #   one-hot token-type columns of the (already bf16) feature slab.
    x = jnp.dot(feat_ref[...], w_enc_ref[...],
                preferred_element_type=f32)                      # (blk, E) f32

    for d in range(DEPTH):                    # static unroll (DEPTH = 2)
        vp = vec_ref[d]                       # (8, 128) f32 per-layer vector pack
        bu_d = vp[0:1, :E]
        ln1g, ln1b = vp[1:2, :E], vp[2:3, :E]
        b1_d = vp[3:4, :FF]
        b2_d = vp[4:5, :E]
        ln2g, ln2b = vp[5:6, :E], vp[6:7, :E]

        # fused QKV projection; 1/sqrt(E) folded into Q and unifyheads folded
        # into the V columns at parameter-pack time.
        qkv = jnp.dot(x.astype(bf16), w_qkv_ref[d],
                      preferred_element_type=f32)                # (blk, 3*H*E)

        head_sum = None
        for hi in range(H):
            # TODO(synk): 32-lane sub-slices at offsets 32/96/160 are not lane-tile
            # aligned; padding each head group to 128 lanes would waste 3x MXU
            # lanes for at most a couple of relayouts -- kept fused.
            qh = qkv[:, hi * E:(hi + 1) * E].astype(bf16)
            kh = qkv[:, (H + hi) * E:(H + hi + 1) * E].astype(bf16)
            vh = qkv[:, (2 * H + hi) * E:(2 * H + hi + 1) * E].astype(bf16)
            logits = jax.lax.dot_general(qh, kh, (((1,), (1,)), ((), ())),
                                         preferred_element_type=f32) + attn_bias
            m = jnp.max(logits, axis=-1, keepdims=True)
            if SOFTMAX_BF16:
                # bf16 exp / multiply on the big (blk, blk) slab; max & sum in f32.
                p = jnp.exp((logits - m).astype(bf16))
                denom = jnp.sum(p.astype(f32), axis=-1, keepdims=True)
                att = p * pl.reciprocal(denom, approx=True).astype(bf16)
            else:
                p = jnp.exp(logits - m)
                denom = jnp.sum(p, axis=-1, keepdims=True)
                att = (p * pl.reciprocal(denom, approx=True)).astype(bf16)
            head = jnp.dot(att, vh, preferred_element_type=f32)  # (blk, E)
            head_sum = head if head_sum is None else head_sum + head

        att_out = head_sum + bu_d                                # unifyheads already folded

        # post-LN residual block (f32 elementwise)
        x = _layer_norm(att_out + x, ln1g, ln1b)
        ff = jnp.dot(x.astype(bf16), w_ff1_ref[d], preferred_element_type=f32) + b1_d
        ff = jnp.maximum(ff, 0.0)
        ff = jnp.dot(ff.astype(bf16), w_ff2_ref[d], preferred_element_type=f32) + b2_d
        x = _layer_norm(ff + x, ln2g, ln2b)

    # toprobs: weight columns zero-padded to 128 -> dense (unmasked) bf16 store
    out = jnp.dot(x.astype(bf16), w_out_ref[...],
                  preferred_element_type=f32) + b_out_ref[...]
    out_ref[...] = out.astype(out_ref.dtype)


PACK_ORDER = ["w_enc", "w_qkv", "w_ff1", "w_ff2", "vec", "w_out", "b_out"]


def _replicated_spec(shape):
    nd = len(shape)
    return pl.BlockSpec(shape, lambda i, _nd=nd: (0,) * _nd)


def _choose_blk(n_rows):
    """Row block: 128 for large batches; >=2 grid steps for small ones (v7x dual TC)."""
    if n_rows >= 256:
        return 128
    half = (n_rows // 2) // N_TOKENS * N_TOKENS
    if half >= N_TOKENS:
        return min(128, half)
    return max(N_TOKENS, n_rows)


def _build_attn_bias(blk):
    """Block-diagonal additive mask (built with numpy -> baked as a constant)."""
    idx = np.arange(blk) // N_TOKENS
    return np.where(idx[:, None] == idx[None, :], 0.0, NEG_INF).astype(np.float32)


def run_planner_kernel(feat, attn_bias, packs, blk):
    n_rows = feat.shape[0]
    assert n_rows % blk == 0
    grid = (n_rows // blk,)

    in_specs = [pl.BlockSpec((blk, F_PAD), lambda i: (i, 0)),
                pl.BlockSpec((blk, blk), lambda i: (0, 0))]
    in_specs += [_replicated_spec(packs[k].shape) for k in PACK_ORDER]
    out_spec = pl.BlockSpec((blk, OUT_PAD), lambda i: (i, 0))

    return pl.pallas_call(
        planner_kernel,
        out_shape=jax.ShapeDtypeStruct((n_rows, OUT_PAD), jnp.bfloat16),
        grid_spec=pltpu.PrefetchScalarGridSpec(
            num_scalar_prefetch=0,
            grid=grid,
            in_specs=in_specs,
            out_specs=out_spec),
        compiler_params=pltpu.CompilerParams(
            dimension_semantics=("parallel",)),
    )(feat, attn_bias, *[packs[k] for k in PACK_ORDER])


# ---------------------------- JAX glue ----------------------------
def binary_embed(x, bit_num, max_num):
    assert x <= max_num
    binary = bin(x)[2:]
    embed = [0.0] * (bit_num - len(binary)) + [float(c) for c in binary]
    return np.asarray(embed, dtype=np.float32)


AGENT_IDS = np.stack([binary_embed(i + 1, ARGS.id_length, ARGS.max_agent)
                      for i in range(N_AGENTS)], axis=0)


def decompose_obs(obs_inputs):
    own = obs_inputs[:, :OBS_OWN_DIM]
    off = OBS_OWN_DIM
    enemy_feats = [obs_inputs[:, off + i * OBS_NF_EN: off + (i + 1) * OBS_NF_EN]
                   for i in range(N_ENEMIES)]
    off = OBS_OWN_DIM + N_ENEMIES * OBS_NF_EN
    ally_feats = [obs_inputs[:, off + i * OBS_NF_AL: off + (i + 1) * OBS_NF_AL]
                  for i in range(N_ALLIES)]
    return own, enemy_feats, ally_feats


def decompose_action_info(la):
    no_attack = la[:, :N_ACTIONS_NO_ATTACK]
    attack = la[:, N_ACTIONS_NO_ATTACK:]
    compact = jnp.concatenate([no_attack, jnp.sum(attack, axis=-1, keepdims=True)], axis=-1)
    return no_attack, attack, compact


def glue_inputs(inputs, hidden_state):
    """Decompose flat per-agent inputs (plain JAX plumbing, mirrors the PyTorch glue)."""
    B = inputs.shape[0]
    bs = B // N_AGENTS

    obs_inputs = inputs[:, :OBS_DIM]
    last_action_inputs = inputs[:, OBS_DIM:OBS_DIM + LAST_ACTION_SHAPE]
    own_obs, enemy_feats, ally_feats = decompose_obs(obs_inputs)

    agent_ids = jnp.asarray(np.tile(AGENT_IDS, (bs, 1)), dtype=inputs.dtype)

    _, attack_info, compact = decompose_action_info(last_action_inputs)
    own_obs = jnp.concatenate([own_obs, agent_ids, compact], axis=-1)          # (B, 21)

    attack_info = jnp.transpose(attack_info)[..., None]                         # (n_en, B, 1)
    enemy_feats = jnp.concatenate([jnp.stack(enemy_feats, axis=0), attack_info], axis=-1)
    enemy_feats = jnp.transpose(enemy_feats, (1, 0, 2))                         # (B, n_en, 7)
    ally_feats = jnp.transpose(jnp.stack(ally_feats, axis=0), (1, 0, 2))        # (B, n_al, 5)

    hidden = hidden_state.reshape(-1, E).astype(jnp.float32)                    # (B, E)
    return (own_obs.astype(jnp.float32), enemy_feats.astype(jnp.float32),
            ally_feats.astype(jnp.float32), hidden)


def pack_features(own_obs, enemy_feats, ally_feats, hidden):
    """One lane-dense bf16 (B*N_TOKENS, 128) activation slab built from concatenations."""
    B = own_obs.shape[0]
    bf16 = jnp.bfloat16

    def token_rows(feat, off, type_idx):
        # feat: (B, k, d) -> (B, k, F_PAD) rows = [0 | feat | 0 | type one-hot | 0]
        k, d = feat.shape[1], feat.shape[2]
        zl = jnp.zeros((B, k, off), bf16)
        zm = jnp.zeros((B, k, TYPE_OFF - off - d), bf16)
        oh = jnp.broadcast_to(jax.nn.one_hot(type_idx, 4, dtype=bf16), (B, k, 4))
        zr = jnp.zeros((B, k, F_PAD - TYPE_OFF - 4), bf16)
        return jnp.concatenate([zl, feat.astype(bf16), zm, oh, zr], axis=-1)

    rows = jnp.concatenate([
        token_rows(own_obs[:, None, :], OWN_OFF, 0),
        token_rows(enemy_feats, EN_OFF, 1),
        token_rows(ally_feats, AL_OFF, 2),
        token_rows(hidden[:, None, :], HID_OFF, 3),
    ], axis=1)                                                    # (B, N_TOKENS, F_PAD)
    return rows.reshape(B * N_TOKENS, F_PAD)


def pack_params(p):
    """Fold / pad / pack the PyTorch-style parameters into lane-dense kernel slabs."""
    f32, bf16 = jnp.float32, jnp.bfloat16
    w_te = p["w_te"]
    b_te = p["b_te"].reshape(-1)

    # fused entity-encoder + token-embedding block-diagonal weight (128, E)
    w_enc = jnp.zeros((F_PAD, E), f32)
    w_enc = w_enc.at[OWN_OFF:OWN_OFF + WRAPPED_OWN_DIM].set(p["w_own"] @ w_te)
    w_enc = w_enc.at[EN_OFF:EN_OFF + EN_DIM].set(p["w_en"] @ w_te)
    w_enc = w_enc.at[AL_OFF:AL_OFF + AL_DIM].set(p["w_al"] @ w_te)
    w_enc = w_enc.at[HID_OFF:HID_OFF + E].set(w_te)
    w_enc = w_enc.at[TYPE_OFF + 0].set(p["b_own"].reshape(-1) @ w_te + b_te)
    w_enc = w_enc.at[TYPE_OFF + 1].set(p["b_en"].reshape(-1) @ w_te + b_te)
    w_enc = w_enc.at[TYPE_OFF + 2].set(p["b_al"].reshape(-1) @ w_te + b_te)
    w_enc = w_enc.at[TYPE_OFF + 3].set(b_te)

    # fused QKV: 1/sqrt(E) folded into Q, unifyheads folded into V (exact, in f32)
    scale = 1.0 / np.sqrt(float(E))
    wv_fold = jnp.stack([
        jnp.concatenate([p["wv"][d][:, hi * E:(hi + 1) * E] @ p["wu"][d][hi * E:(hi + 1) * E, :]
                         for hi in range(H)], axis=-1)
        for d in range(DEPTH)], axis=0)                                     # (DEPTH, E, H*E)
    w_qkv = jnp.concatenate([p["wq"] * scale, p["wk"], wv_fold], axis=-1)   # (DEPTH, E, 3*H*E)

    # per-layer small vectors packed into one (DEPTH, 8, 128) slab
    vec = jnp.zeros((DEPTH, 8, 128), f32)
    vec = vec.at[:, 0, :E].set(p["bu"])
    vec = vec.at[:, 1, :E].set(p["ln1_g"])
    vec = vec.at[:, 2, :E].set(p["ln1_b"])
    vec = vec.at[:, 3, :FF].set(p["b1"])
    vec = vec.at[:, 4, :E].set(p["b2"])
    vec = vec.at[:, 5, :E].set(p["ln2_g"])
    vec = vec.at[:, 6, :E].set(p["ln2_b"])

    # toprobs, zero-padded to 128 output columns for lane-dense stores
    w_out = jnp.zeros((E, OUT_PAD), f32).at[:, :E].set(p["w_tp"])
    b_out = jnp.zeros((1, OUT_PAD), f32).at[:, :E].set(p["b_tp"])

    return {
        "w_enc": w_enc.astype(bf16),
        "w_qkv": w_qkv.astype(bf16),
        "w_ff1": p["w1"].astype(bf16),
        "w_ff2": p["w2"].astype(bf16),
        "vec": vec,
        "w_out": w_out.astype(bf16),
        "b_out": b_out,
    }


@jax.jit
def _planner_forward_jit(packs, inputs, hidden_state):
    """Full glue + packing + Pallas hot path + output slicing under one jit."""
    B = inputs.shape[0]
    own_obs, enemy_feats, ally_feats, hidden = glue_inputs(inputs, hidden_state)
    feat = pack_features(own_obs, enemy_feats, ally_feats, hidden)    # (B*T, 128) bf16

    n_rows = feat.shape[0]
    blk = _choose_blk(n_rows)
    n_pad = -(-n_rows // blk) * blk
    if n_pad > n_rows:
        # padded (all-zero) agent groups are self-contained under the block-diagonal
        # mask and are sliced off below.
        feat = jnp.pad(feat, ((0, n_pad - n_rows), (0, 0)))
    attn_bias = jnp.asarray(_build_attn_bias(blk))                    # trace-time constant

    out = run_planner_kernel(feat, attn_bias, packs, blk)             # (n_pad, 128) bf16
    out = out[:n_rows, :E].astype(jnp.float32).reshape(B, N_TOKENS, E)

    out = out.reshape(B, ARGS.num_stack_frames, N_TOKENS, E)
    h = out[:, -1, -1]                                                # (B, E)
    outputs = out[:, :, :-1]
    own_out_h = outputs[:, -1, 0][:, None, :]                         # (B, 1, E)
    enemy_out_h = outputs[:, -1, 1:1 + N_ENEMIES]                     # (B, n_en, E)
    ally_out_h = outputs[:, -1, 1 + N_ENEMIES:1 + N_ENEMIES + N_ALLIES]   # (B, n_al, E)
    out_loss = jnp.asarray(0.0, dtype=jnp.float32)
    return (own_out_h, enemy_out_h, ally_out_h), h, out_loss


def planner_forward(params, inputs, hidden_state, packs=None):
    """PlannerModel.forward in test mode (loss_out=False, vq_skill=False)."""
    if packs is None:
        packs = pack_params(params)
    (own_out_h, enemy_out_h, ally_out_h), h, out_loss = _planner_forward_jit(
        packs, inputs, hidden_state)
    # TODO(synk): MergeRec reconstruction loss / SkillModule VQ path (loss_out=True,
    # vq_skill=True) are training-only branches and are not part of this test-mode forward.
    return [own_out_h, enemy_out_h, ally_out_h], h, out_loss


# ------------------- pure-JAX f32 reference (for correctness) -------------------
def planner_reference(params, inputs, hidden_state):
    own_obs, enemy_feats, ally_feats, hidden = glue_inputs(inputs, hidden_state)
    own_h = own_obs @ params["w_own"] + params["b_own"]
    en_h = enemy_feats @ params["w_en"] + params["b_en"]
    al_h = ally_feats @ params["w_al"] + params["b_al"]
    x = jnp.concatenate([own_h[:, None], en_h, al_h, hidden[:, None]], axis=1)
    x = x @ params["w_te"] + params["b_te"]
    scale = float(E) ** 0.25
    for d in range(DEPTH):
        q = x @ params["wq"][d]
        k = x @ params["wk"][d]
        v = x @ params["wv"][d]
        att_out = jnp.zeros_like(x)
        for hi in range(H):
            sl = slice(hi * E, (hi + 1) * E)
            a = jax.nn.softmax(
                jnp.einsum('bqd,bkd->bqk', q[..., sl] / scale, k[..., sl] / scale), axis=-1)
            att_out = att_out + jnp.einsum('bqk,bkd->bqd', a, v[..., sl]) @ params["wu"][d][sl]
        att_out = att_out + params["bu"][d]
        x = _layer_norm(att_out + x, params["ln1_g"][d], params["ln1_b"][d])
        ff = jnp.maximum(x @ params["w1"][d] + params["b1"][d], 0.0)
        ff = ff @ params["w2"][d] + params["b2"][d]
        x = _layer_norm(ff + x, params["ln2_g"][d], params["ln2_b"][d])
    return x @ params["w_tp"] + params["b_tp"]                  # (B, T, E)


# ---------------------------- parameter init ----------------------------
def init_params(key):
    ks = jax.random.split(key, 32)
    p = {}

    def w(k, shape, scale=0.1):
        return (scale * jax.random.normal(k, shape)).astype(jnp.float32)

    p["w_own"] = w(ks[0], (WRAPPED_OWN_DIM, E))
    p["b_own"] = jnp.zeros((1, E), jnp.float32)
    p["w_en"] = w(ks[1], (EN_DIM, E))
    p["b_en"] = jnp.zeros((1, E), jnp.float32)
    p["w_al"] = w(ks[2], (AL_DIM, E))
    p["b_al"] = jnp.zeros((1, E), jnp.float32)

    p["w_te"] = w(ks[3], (E, E))
    p["b_te"] = jnp.zeros((1, E), jnp.float32)

    p["wq"] = w(ks[4], (DEPTH, E, H * E))
    p["wk"] = w(ks[5], (DEPTH, E, H * E))
    p["wv"] = w(ks[6], (DEPTH, E, H * E))
    p["wu"] = w(ks[7], (DEPTH, H * E, E))
    p["bu"] = jnp.zeros((DEPTH, E), jnp.float32)
    p["ln1_g"] = jnp.ones((DEPTH, E), jnp.float32)
    p["ln1_b"] = jnp.zeros((DEPTH, E), jnp.float32)
    p["w1"] = w(ks[8], (DEPTH, E, FF))
    p["b1"] = jnp.zeros((DEPTH, FF), jnp.float32)
    p["w2"] = w(ks[9], (DEPTH, FF, E))
    p["b2"] = jnp.zeros((DEPTH, E), jnp.float32)
    p["ln2_g"] = jnp.ones((DEPTH, E), jnp.float32)
    p["ln2_b"] = jnp.zeros((DEPTH, E), jnp.float32)

    p["w_tp"] = w(ks[10], (E, E))
    p["b_tp"] = jnp.zeros((1, E), jnp.float32)
    return p


# ---------------------------- main ----------------------------
if __name__ == "__main__":
    key = jax.random.PRNGKey(0)
    k_par, k_obs, k_act = jax.random.split(key, 3)

    bs = 2
    B = bs * N_AGENTS  # 8 agent-rows

    params = init_params(k_par)
    packs = pack_params(params)

    # per-agent flat inputs: [obs | one-hot last action | (unused) id slot]
    obs_part = jax.random.normal(k_obs, (B, OBS_DIM), dtype=jnp.float32)
    last_actions = jax.random.randint(k_act, (B,), 0, LAST_ACTION_SHAPE)
    la_part = jax.nn.one_hot(last_actions, LAST_ACTION_SHAPE, dtype=jnp.float32)
    id_part = jnp.zeros((B, ARGS.id_length), jnp.float32)
    inputs = jnp.concatenate([obs_part, la_part, id_part], axis=-1)  # (8, 56)

    hidden_state = jnp.zeros((B, E), jnp.float32)                    # init_hidden()

    (own_out_h, enemy_out_h, ally_out_h), h, out_loss = planner_forward(
        params, inputs, hidden_state, packs=packs)
    jax.block_until_ready((own_out_h, enemy_out_h, ally_out_h, h, out_loss))

    assert own_out_h.shape == (B, 1, E)
    assert enemy_out_h.shape == (B, N_ENEMIES, E)
    assert ally_out_h.shape == (B, N_ALLIES, E)
    assert h.shape == (B, E)

    # numerics: compare against a pure-JAX f32 reference of the same forward
    ref_tokens = planner_reference(params, inputs, hidden_state)               # (B, T, E)
    got_tokens = jnp.concatenate(
        [own_out_h, enemy_out_h, ally_out_h, h[:, None, :]], axis=1)           # (B, T, E)
    np.testing.assert_allclose(np.asarray(got_tokens), np.asarray(ref_tokens),
                               atol=5e-2, rtol=5e-2)

    print("KERNEL_OK")
</pallas_src>

<mosaic_0001>
module attributes {stable_mosaic.version = 11 : i64} {
  func.func @planner_kernel(%arg0: i32, %arg1: memref<32x128xbf16, #tpu.memory_space<vmem>>, %arg2: memref<32x32xf32, #tpu.memory_space<vmem>>, %arg3: memref<128x32xbf16, #tpu.memory_space<vmem>>, %arg4: memref<2x32x192xbf16, #tpu.memory_space<vmem>>, %arg5: memref<2x32x128xbf16, #tpu.memory_space<vmem>>, %arg6: memref<2x128x32xbf16, #tpu.memory_space<vmem>>, %arg7: memref<2x8x128xf32, #tpu.memory_space<vmem>>, %arg8: memref<32x128xbf16, #tpu.memory_space<vmem>>, %arg9: memref<1x128xf32, #tpu.memory_space<vmem>>, %arg10: memref<32x128xbf16, #tpu.memory_space<vmem>>) attributes {dimension_semantics = [#tpu.dimension_semantics<parallel>], iteration_bounds = array<i64: 2>, scalar_prefetch = 0 : i64, scratch_operands = 0 : i64, tpu.core_type = #tpu.core_type<tc>, window_params = [{transform_indices = @transform_0, window_bounds = array<i64: 32, 128>}, {pipeline_mode = #tpu.pipeline_mode<synchronous>, transform_indices = @transform_1, window_bounds = array<i64: 32, 32>}, {pipeline_mode = #tpu.pipeline_mode<synchronous>, transform_indices = @transform_2, window_bounds = array<i64: 128, 32>}, {pipeline_mode = #tpu.pipeline_mode<synchronous>, transform_indices = @transform_3, window_bounds = array<i64: 2, 32, 192>}, {pipeline_mode = #tpu.pipeline_mode<synchronous>, transform_indices = @transform_4, window_bounds = array<i64: 2, 32, 128>}, {pipeline_mode = #tpu.pipeline_mode<synchronous>, transform_indices = @transform_5, window_bounds = array<i64: 2, 128, 32>}, {pipeline_mode = #tpu.pipeline_mode<synchronous>, transform_indices = @transform_6, window_bounds = array<i64: 2, 8, 128>}, {pipeline_mode = #tpu.pipeline_mode<synchronous>, transform_indices = @transform_7, window_bounds = array<i64: 32, 128>}, {pipeline_mode = #tpu.pipeline_mode<synchronous>, transform_indices = @transform_8, window_bounds = array<i64: 1, 128>}, {transform_indices = @transform_9, window_bounds = array<i64: 32, 128>}]} {
    %c0 = arith.constant 0 : index
    %c0_0 = arith.constant 0 : index
    %0 = vector.load %arg2[%c0, %c0_0] : memref<32x32xf32, #tpu.memory_space<vmem>>, vector<32x32xf32>
    %c0_1 = arith.constant 0 : index
    %c0_2 = arith.constant 0 : index
    %1 = vector.load %arg1[%c0_1, %c0_2] : memref<32x128xbf16, #tpu.memory_space<vmem>>, vector<32x128xbf16>
    %c0_3 = arith.constant 0 : index
    %c0_4 = arith.constant 0 : index
    %2 = vector.load %arg3[%c0_3, %c0_4] : memref<128x32xbf16, #tpu.memory_space<vmem>>, vector<128x32xbf16>
    %cst = arith.constant dense<0.000000e+00> : vector<32x32xf32>
    %3 = tpu.matmul %1, %2, %cst {dimension_numbers = #tpu.dot_dimension_numbers<[1], [0], [0], [1], [0, 0, 1, 1], [], []>} : vector<32x128xbf16>, vector<128x32xbf16>, vector<32x32xf32> -> vector<32x32xf32>
    %c0_5 = arith.constant 0 : index
    %c0_6 = arith.constant 0 : index
    %c0_7 = arith.constant 0 : index
    %4 = vector.load %arg7[%c0_5, %c0_6, %c0_7] : memref<2x8x128xf32, #tpu.memory_space<vmem>>, vector<1x8x128xf32>
    %5 = vector.shape_cast %4 : vector<1x8x128xf32> to vector<8x128xf32>
    %6 = vector.extract_strided_slice %5 {offsets = [0, 0], sizes = [1, 32], strides = [1, 1]} : vector<8x128xf32> to vector<1x32xf32>
    %7 = vector.extract_strided_slice %5 {offsets = [1, 0], sizes = [1, 32], strides = [1, 1]} : vector<8x128xf32> to vector<1x32xf32>
    %8 = vector.extract_strided_slice %5 {offsets = [2, 0], sizes = [1, 32], strides = [1, 1]} : vector<8x128xf32> to vector<1x32xf32>
    %9 = vector.extract_strided_slice %5 {offsets = [3, 0], sizes = [1, 128], strides = [1, 1]} : vector<8x128xf32> to vector<1x128xf32>
    %10 = vector.extract_strided_slice %5 {offsets = [4, 0], sizes = [1, 32], strides = [1, 1]} : vector<8x128xf32> to vector<1x32xf32>
    %11 = vector.extract_strided_slice %5 {offsets = [5, 0], sizes = [1, 32], strides = [1, 1]} : vector<8x128xf32> to vector<1x32xf32>
    %12 = vector.extract_strided_slice %5 {offsets = [6, 0], sizes = [1, 32], strides = [1, 1]} : vector<8x128xf32> to vector<1x32xf32>
    %13 = arith.truncf %3 : vector<32x32xf32> to vector<32x32xbf16>
    %c0_8 = arith.constant 0 : index
    %c0_9 = arith.constant 0 : index
    %c0_10 = arith.constant 0 : index
    %14 = vector.load %arg4[%c0_8, %c0_9, %c0_10] : memref<2x32x192xbf16, #tpu.memory_space<vmem>>, vector<1x32x192xbf16>
    %15 = vector.shape_cast %14 : vector<1x32x192xbf16> to vector<32x192xbf16>
    %cst_11 = arith.constant dense<0.000000e+00> : vector<32x192xf32>
    %16 = tpu.matmul %13, %15, %cst_11 {dimension_numbers = #tpu.dot_dimension_numbers<[1], [0], [0], [1], [0, 0, 1, 1], [], []>} : vector<32x32xbf16>, vector<32x192xbf16>, vector<32x192xf32> -> vector<32x192xf32>
    %17 = vector.extract_strided_slice %16 {offsets = [0, 0], sizes = [32, 32], strides = [1, 1]} : vector<32x192xf32> to vector<32x32xf32>
    %18 = arith.truncf %17 : vector<32x32xf32> to vector<32x32xbf16>
    %19 = vector.extract_strided_slice %16 {offsets = [0, 64], sizes = [32, 32], strides = [1, 1]} : vector<32x192xf32> to vector<32x32xf32>
    %20 = arith.truncf %19 : vector<32x32xf32> to vector<32x32xbf16>
    %21 = vector.extract_strided_slice %16 {offsets = [0, 128], sizes = [32, 32], strides = [1, 1]} : vector<32x192xf32> to vector<32x32xf32>
    %22 = arith.truncf %21 : vector<32x32xf32> to vector<32x32xbf16>
    %cst_12 = arith.constant dense<0.000000e+00> : vector<32x32xf32>
    %23 = tpu.matmul %18, %20, %cst_12 {dimension_numbers = #tpu.dot_dimension_numbers<[1], [1], [0], [0], [0, 0, 1, 0], [], []>} : vector<32x32xbf16>, vector<32x32xbf16>, vector<32x32xf32> -> vector<32x32xf32>
    %24 = arith.addf %23, %0 : vector<32x32xf32>
    %cst_13 = arith.constant dense<0xFF800000> : vector<32xf32>
    %25 = vector.multi_reduction <maximumf>, %24, %cst_13 [1] : vector<32x32xf32> to vector<32xf32>
    %26 = vector.shape_cast %25 : vector<32xf32> to vector<32x1xf32>
    %27 = vector.broadcast %26 : vector<32x1xf32> to vector<32x32xf32>
    %28 = arith.subf %24, %27 : vector<32x32xf32>
    %29 = math.exp %28 : vector<32x32xf32>
    %cst_14 = arith.constant dense<0.000000e+00> : vector<32xf32>
    %30 = vector.multi_reduction <add>, %29, %cst_14 [1] : vector<32x32xf32> to vector<32xf32>
    %31 = vector.shape_cast %30 : vector<32xf32> to vector<32x1xf32>
    %32 = tpu.reciprocal %31 {approx = true} : vector<32x1xf32> -> vector<32x1xf32>
    %33 = vector.broadcast %32 : vector<32x1xf32> to vector<32x32xf32>
    %34 = arith.mulf %29, %33 : vector<32x32xf32>
    %35 = arith.truncf %34 : vector<32x32xf32> to vector<32x32xbf16>
    %cst_15 = arith.constant dense<0.000000e+00> : vector<32x32xf32>
    %36 = tpu.matmul %35, %22, %cst_15 {dimension_numbers = #tpu.dot_dimension_numbers<[1], [0], [0], [1], [0, 0, 1, 1], [], []>} : vector<32x32xbf16>, vector<32x32xbf16>, vector<32x32xf32> -> vector<32x32xf32>
    %37 = vector.extract_strided_slice %16 {offsets = [0, 32], sizes = [32, 32], strides = [1, 1]} : vector<32x192xf32> to vector<32x32xf32>
    %38 = arith.truncf %37 : vector<32x32xf32> to vector<32x32xbf16>
    %39 = vector.extract_strided_slice %16 {offsets = [0, 96], sizes = [32, 32], strides = [1, 1]} : vector<32x192xf32> to vector<32x32xf32>
    %40 = arith.truncf %39 : vector<32x32xf32> to vector<32x32xbf16>
    %41 = vector.extract_strided_slice %16 {offsets = [0, 160], sizes = [32, 32], strides = [1, 1]} : vector<32x192xf32> to vector<32x32xf32>
    %42 = arith.truncf %41 : vector<32x32xf32> to vector<32x32xbf16>
    %cst_16 = arith.constant dense<0.000000e+00> : vector<32x32xf32>
    %43 = tpu.matmul %38, %40, %cst_16 {dimension_numbers = #tpu.dot_dimension_numbers<[1], [1], [0], [0], [0, 0, 1, 0], [], []>} : vector<32x32xbf16>, vector<32x32xbf16>, vector<32x32xf32> -> vector<32x32xf32>
    %44 = arith.addf %43, %0 : vector<32x32xf32>
    %cst_17 = arith.constant dense<0xFF800000> : vector<32xf32>
    %45 = vector.multi_reduction <maximumf>, %44, %cst_17 [1] : vector<32x32xf32> to vector<32xf32>
    %46 = vector.shape_cast %45 : vector<32xf32> to vector<32x1xf32>
    %47 = vector.broadcast %46 : vector<32x1xf32> to vector<32x32xf32>
    %48 = arith.subf %44, %47 : vector<32x32xf32>
    %49 = math.exp %48 : vector<32x32xf32>
    %cst_18 = arith.constant dense<0.000000e+00> : vector<32xf32>
    %50 = vector.multi_reduction <add>, %49, %cst_18 [1] : vector<32x32xf32> to vector<32xf32>
    %51 = vector.shape_cast %50 : vector<32xf32> to vector<32x1xf32>
    %52 = tpu.reciprocal %51 {approx = true} : vector<32x1xf32> -> vector<32x1xf32>
    %53 = vector.broadcast %52 : vector<32x1xf32> to vector<32x32xf32>
    %54 = arith.mulf %49, %53 : vector<32x32xf32>
    %55 = arith.truncf %54 : vector<32x32xf32> to vector<32x32xbf16>
    %cst_19 = arith.constant dense<0.000000e+00> : vector<32x32xf32>
    %56 = tpu.matmul %55, %42, %cst_19 {dimension_numbers = #tpu.dot_dimension_numbers<[1], [0], [0], [1], [0, 0, 1, 1], [], []>} : vector<32x32xbf16>, vector<32x32xbf16>, vector<32x32xf32> -> vector<32x32xf32>
    %57 = arith.addf %36, %56 : vector<32x32xf32>
    %58 = vector.broadcast %6 : vector<1x32xf32> to vector<32x32xf32>
    %59 = arith.addf %57, %58 : vector<32x32xf32>
    %60 = arith.addf %59, %3 : vector<32x32xf32>
    %cst_20 = arith.constant dense<0.000000e+00> : vector<32xf32>
    %61 = vector.multi_reduction <add>, %60, %cst_20 [1] : vector<32x32xf32> to vector<32xf32>
    %62 = vector.shape_cast %61 : vector<32xf32> to vector<32x1xf32>
    %cst_21 = arith.constant 3.200000e+01 : f32
    %63 = vector.broadcast %cst_21 : f32 to vector<32x1xf32>
    %64 = arith.divf %62, %63 : vector<32x1xf32>
    %65 = vector.broadcast %64 : vector<32x1xf32> to vector<32x32xf32>
    %66 = arith.subf %60, %65 : vector<32x32xf32>
    %67 = arith.mulf %66, %66 : vector<32x32xf32>
    %cst_22 = arith.constant dense<0.000000e+00> : vector<32xf32>
    %68 = vector.multi_reduction <add>, %67, %cst_22 [1] : vector<32x32xf32> to vector<32xf32>
    %69 = vector.shape_cast %68 : vector<32xf32> to vector<32x1xf32>
    %cst_23 = arith.constant 3.200000e+01 : f32
    %70 = vector.broadcast %cst_23 : f32 to vector<32x1xf32>
    %71 = arith.divf %69, %70 : vector<32x1xf32>
    %72 = vector.broadcast %64 : vector<32x1xf32> to vector<32x32xf32>
    %73 = arith.subf %60, %72 : vector<32x32xf32>
    %cst_24 = arith.constant 9.99999974E-6 : f32
    %74 = vector.broadcast %cst_24 : f32 to vector<32x1xf32>
    %75 = arith.addf %71, %74 : vector<32x1xf32>
    %76 = math.rsqrt %75 : vector<32x1xf32>
    %77 = vector.broadcast %76 : vector<32x1xf32> to vector<32x32xf32>
    %78 = arith.mulf %73, %77 : vector<32x32xf32>
    %79 = vector.broadcast %7 : vector<1x32xf32> to vector<32x32xf32>
    %80 = arith.mulf %78, %79 : vector<32x32xf32>
    %81 = vector.broadcast %8 : vector<1x32xf32> to vector<32x32xf32>
    %82 = arith.addf %80, %81 : vector<32x32xf32>
    %83 = arith.truncf %82 : vector<32x32xf32> to vector<32x32xbf16>
    %c0_25 = arith.constant 0 : index
    %c0_26 = arith.constant 0 : index
    %c0_27 = arith.constant 0 : index
    %84 = vector.load %arg5[%c0_25, %c0_26, %c0_27] : memref<2x32x128xbf16, #tpu.memory_space<vmem>>, vector<1x32x128xbf16>
    %85 = vector.shape_cast %84 : vector<1x32x128xbf16> to vector<32x128xbf16>
    %cst_28 = arith.constant dense<0.000000e+00> : vector<32x128xf32>
    %86 = tpu.matmul %83, %85, %cst_28 {dimension_numbers = #tpu.dot_dimension_numbers<[1], [0], [0], [1], [0, 0, 1, 1], [], []>} : vector<32x32xbf16>, vector<32x128xbf16>, vector<32x128xf32> -> vector<32x128xf32>
    %87 = vector.broadcast %9 : vector<1x128xf32> to vector<32x128xf32>
    %88 = arith.addf %86, %87 : vector<32x128xf32>
    %cst_29 = arith.constant 0.000000e+00 : f32
    %89 = vector.broadcast %cst_29 : f32 to vector<32x128xf32>
    %90 = arith.maximumf %88, %89 : vector<32x128xf32>
    %91 = arith.truncf %90 : vector<32x128xf32> to vector<32x128xbf16>
    %c0_30 = arith.constant 0 : index
    %c0_31 = arith.constant 0 : index
    %c0_32 = arith.constant 0 : index
    %92 = vector.load %arg6[%c0_30, %c0_31, %c0_32] : memref<2x128x32xbf16, #tpu.memory_space<vmem>>, vector<1x128x32xbf16>
    %93 = vector.shape_cast %92 : vector<1x128x32xbf16> to vector<128x32xbf16>
    %cst_33 = arith.constant dense<0.000000e+00> : vector<32x32xf32>
    %94 = tpu.matmul %91, %93, %cst_33 {dimension_numbers = #tpu.dot_dimension_numbers<[1], [0], [0], [1], [0, 0, 1, 1], [], []>} : vector<32x128xbf16>, vector<128x32xbf16>, vector<32x32xf32> -> vector<32x32xf32>
    %95 = vector.broadcast %10 : vector<1x32xf32> to vector<32x32xf32>
    %96 = arith.addf %94, %95 : vector<32x32xf32>
    %97 = arith.addf %96, %82 : vector<32x32xf32>
    %cst_34 = arith.constant dense<0.000000e+00> : vector<32xf32>
    %98 = vector.multi_reduction <add>, %97, %cst_34 [1] : vector<32x32xf32> to vector<32xf32>
    %99 = vector.shape_cast %98 : vector<32xf32> to vector<32x1xf32>
    %cst_35 = arith.constant 3.200000e+01 : f32
    %100 = vector.broadcast %cst_35 : f32 to vector<32x1xf32>
    %101 = arith.divf %99, %100 : vector<32x1xf32>
    %102 = vector.broadcast %101 : vector<32x1xf32> to vector<32x32xf32>
    %103 = arith.subf %97, %102 : vector<32x32xf32>
    %104 = arith.mulf %103, %103 : vector<32x32xf32>
    %cst_36 = arith.constant dense<0.000000e+00> : vector<32xf32>
    %105 = vector.multi_reduction <add>, %104, %cst_36 [1] : vector<32x32xf32> to vector<32xf32>
    %106 = vector.shape_cast %105 : vector<32xf32> to vector<32x1xf32>
    %cst_37 = arith.constant 3.200000e+01 : f32
    %107 = vector.broadcast %cst_37 : f32 to vector<32x1xf32>
    %108 = arith.divf %106, %107 : vector<32x1xf32>
    %109 = vector.broadcast %101 : vector<32x1xf32> to vector<32x32xf32>
    %110 = arith.subf %97, %109 : vector<32x32xf32>
    %cst_38 = arith.constant 9.99999974E-6 : f32
    %111 = vector.broadcast %cst_38 : f32 to vector<32x1xf32>
    %112 = arith.addf %108, %111 : vector<32x1xf32>
    %113 = math.rsqrt %112 : vector<32x1xf32>
    %114 = vector.broadcast %113 : vector<32x1xf32> to vector<32x32xf32>
    %115 = arith.mulf %110, %114 : vector<32x32xf32>
    %116 = vector.broadcast %11 : vector<1x32xf32> to vector<32x32xf32>
    %117 = arith.mulf %115, %116 : vector<32x32xf32>
    %118 = vector.broadcast %12 : vector<1x32xf32> to vector<32x32xf32>
    %119 = arith.addf %117, %118 : vector<32x32xf32>
    %c1 = arith.constant 1 : index
    %c0_39 = arith.constant 0 : index
    %c0_40 = arith.constant 0 : index
    %120 = vector.load %arg7[%c1, %c0_39, %c0_40] : memref<2x8x128xf32, #tpu.memory_space<vmem>>, vector<1x8x128xf32>
    %121 = vector.shape_cast %120 : vector<1x8x128xf32> to vector<8x128xf32>
    %122 = vector.extract_strided_slice %121 {offsets = [0, 0], sizes = [1, 32], strides = [1, 1]} : vector<8x128xf32> to vector<1x32xf32>
    %123 = vector.extract_strided_slice %121 {offsets = [1, 0], sizes = [1, 32], strides = [1, 1]} : vector<8x128xf32> to vector<1x32xf32>
    %124 = vector.extract_strided_slice %121 {offsets = [2, 0], sizes = [1, 32], strides = [1, 1]} : vector<8x128xf32> to vector<1x32xf32>
    %125 = vector.extract_strided_slice %121 {offsets = [3, 0], sizes = [1, 128], strides = [1, 1]} : vector<8x128xf32> to vector<1x128xf32>
    %126 = vector.extract_strided_slice %121 {offsets = [4, 0], sizes = [1, 32], strides = [1, 1]} : vector<8x128xf32> to vector<1x32xf32>
    %127 = vector.extract_strided_slice %121 {offsets = [5, 0], sizes = [1, 32], strides = [1, 1]} : vector<8x128xf32> to vector<1x32xf32>
    %128 = vector.extract_strided_slice %121 {offsets = [6, 0], sizes = [1, 32], strides = [1, 1]} : vector<8x128xf32> to vector<1x32xf32>
    %129 = arith.truncf %119 : vector<32x32xf32> to vector<32x32xbf16>
    %c1_41 = arith.constant 1 : index
    %c0_42 = arith.constant 0 : index
    %c0_43 = arith.constant 0 : index
    %130 = vector.load %arg4[%c1_41, %c0_42, %c0_43] : memref<2x32x192xbf16, #tpu.memory_space<vmem>>, vector<1x32x192xbf16>
    %131 = vector.shape_cast %130 : vector<1x32x192xbf16> to vector<32x192xbf16>
    %cst_44 = arith.constant dense<0.000000e+00> : vector<32x192xf32>
    %132 = tpu.matmul %129, %131, %cst_44 {dimension_numbers = #tpu.dot_dimension_numbers<[1], [0], [0], [1], [0, 0, 1, 1], [], []>} : vector<32x32xbf16>, vector<32x192xbf16>, vector<32x192xf32> -> vector<32x192xf32>
    %133 = vector.extract_strided_slice %132 {offsets = [0, 0], sizes = [32, 32], strides = [1, 1]} : vector<32x192xf32> to vector<32x32xf32>
    %134 = arith.truncf %133 : vector<32x32xf32> to vector<32x32xbf16>
    %135 = vector.extract_strided_slice %132 {offsets = [0, 64], sizes = [32, 32], strides = [1, 1]} : vector<32x192xf32> to vector<32x32xf32>
    %136 = arith.truncf %135 : vector<32x32xf32> to vector<32x32xbf16>
    %137 = vector.extract_strided_slice %132 {offsets = [0, 128], sizes = [32, 32], strides = [1, 1]} : vector<32x192xf32> to vector<32x32xf32>
    %138 = arith.truncf %137 : vector<32x32xf32> to vector<32x32xbf16>
    %cst_45 = arith.constant dense<0.000000e+00> : vector<32x32xf32>
    %139 = tpu.matmul %134, %136, %cst_45 {dimension_numbers = #tpu.dot_dimension_numbers<[1], [1], [0], [0], [0, 0, 1, 0], [], []>} : vector<32x32xbf16>, vector<32x32xbf16>, vector<32x32xf32> -> vector<32x32xf32>
    %140 = arith.addf %139, %0 : vector<32x32xf32>
    %cst_46 = arith.constant dense<0xFF800000> : vector<32xf32>
    %141 = vector.multi_reduction <maximumf>, %140, %cst_46 [1] : vector<32x32xf32> to vector<32xf32>
    %142 = vector.shape_cast %141 : vector<32xf32> to vector<32x1xf32>
    %143 = vector.broadcast %142 : vector<32x1xf32> to vector<32x32xf32>
    %144 = arith.subf %140, %143 : vector<32x32xf32>
    %145 = math.exp %144 : vector<32x32xf32>
    %cst_47 = arith.constant dense<0.000000e+00> : vector<32xf32>
    %146 = vector.multi_reduction <add>, %145, %cst_47 [1] : vector<32x32xf32> to vector<32xf32>
    %147 = vector.shape_cast %146 : vector<32xf32> to vector<32x1xf32>
    %148 = tpu.reciprocal %147 {approx = true} : vector<32x1xf32> -> vector<32x1xf32>
    %149 = vector.broadcast %148 : vector<32x1xf32> to vector<32x32xf32>
    %150 = arith.mulf %145, %149 : vector<32x32xf32>
    %151 = arith.truncf %150 : vector<32x32xf32> to vector<32x32xbf16>
    %cst_48 = arith.constant dense<0.000000e+00> : vector<32x32xf32>
    %152 = tpu.matmul %151, %138, %cst_48 {dimension_numbers = #tpu.dot_dimension_numbers<[1], [0], [0], [1], [0, 0, 1, 1], [], []>} : vector<32x32xbf16>, vector<32x32xbf16>, vector<32x32xf32> -> vector<32x32xf32>
    %153 = vector.extract_strided_slice %132 {offsets = [0, 32], sizes = [32, 32], strides = [1, 1]} : vector<32x192xf32> to vector<32x32xf32>
    %154 = arith.truncf %153 : vector<32x32xf32> to vector<32x32xbf16>
    %155 = vector.extract_strided_slice %132 {offsets = [0, 96], sizes = [32, 32], strides = [1, 1]} : vector<32x192xf32> to vector<32x32xf32>
    %156 = arith.truncf %155 : vector<32x32xf32> to vector<32x32xbf16>
    %157 = vector.extract_strided_slice %132 {offsets = [0, 160], sizes = [32, 32], strides = [1, 1]} : vector<32x192xf32> to vector<32x32xf32>
    %158 = arith.truncf %157 : vector<32x32xf32> to vector<32x32xbf16>
    %cst_49 = arith.constant dense<0.000000e+00> : vector<32x32xf32>
    %159 = tpu.matmul %154, %156, %cst_49 {dimension_numbers = #tpu.dot_dimension_numbers<[1], [1], [0], [0], [0, 0, 1, 0], [], []>} : vector<32x32xbf16>, vector<32x32xbf16>, vector<32x32xf32> -> vector<32x32xf32>
    %160 = arith.addf %159, %0 : vector<32x32xf32>
    %cst_50 = arith.constant dense<0xFF800000> : vector<32xf32>
    %161 = vector.multi_reduction <maximumf>, %160, %cst_50 [1] : vector<32x32xf32> to vector<32xf32>
    %162 = vector.shape_cast %161 : vector<32xf32> to vector<32x1xf32>
    %163 = vector.broadcast %162 : vector<32x1xf32> to vector<32x32xf32>
    %164 = arith.subf %160, %163 : vector<32x32xf32>
    %165 = math.exp %164 : vector<32x32xf32>
    %cst_51 = arith.constant dense<0.000000e+00> : vector<32xf32>
    %166 = vector.multi_reduction <add>, %165, %cst_51 [1] : vector<32x32xf32> to vector<32xf32>
    %167 = vector.shape_cast %166 : vector<32xf32> to vector<32x1xf32>
    %168 = tpu.reciprocal %167 {approx = true} : vector<32x1xf32> -> vector<32x1xf32>
    %169 = vector.broadcast %168 : vector<32x1xf32> to vector<32x32xf32>
    %170 = arith.mulf %165, %169 : vector<32x32xf32>
    %171 = arith.truncf %170 : vector<32x32xf32> to vector<32x32xbf16>
    %cst_52 = arith.constant dense<0.000000e+00> : vector<32x32xf32>
    %172 = tpu.matmul %171, %158, %cst_52 {dimension_numbers = #tpu.dot_dimension_numbers<[1], [0], [0], [1], [0, 0, 1, 1], [], []>} : vector<32x32xbf16>, vector<32x32xbf16>, vector<32x32xf32> -> vector<32x32xf32>
    %173 = arith.addf %152, %172 : vector<32x32xf32>
    %174 = vector.broadcast %122 : vector<1x32xf32> to vector<32x32xf32>
    %175 = arith.addf %173, %174 : vector<32x32xf32>
    %176 = arith.addf %175, %119 : vector<32x32xf32>
    %cst_53 = arith.constant dense<0.000000e+00> : vector<32xf32>
    %177 = vector.multi_reduction <add>, %176, %cst_53 [1] : vector<32x32xf32> to vector<32xf32>
    %178 = vector.shape_cast %177 : vector<32xf32> to vector<32x1xf32>
    %cst_54 = arith.constant 3.200000e+01 : f32
    %179 = vector.broadcast %cst_54 : f32 to vector<32x1xf32>
    %180 = arith.divf %178, %179 : vector<32x1xf32>
    %181 = vector.broadcast %180 : vector<32x1xf32> to vector<32x32xf32>
    %182 = arith.subf %176, %181 : vector<32x32xf32>
    %183 = arith.mulf %182, %182 : vector<32x32xf32>
    %cst_55 = arith.constant dense<0.000000e+00> : vector<32xf32>
    %184 = vector.multi_reduction <add>, %183, %cst_55 [1] : vector<32x32xf32> to vector<32xf32>
    %185 = vector.shape_cast %184 : vector<32xf32> to vector<32x1xf32>
    %cst_56 = arith.constant 3.200000e+01 : f32
    %186 = vector.broadcast %cst_56 : f32 to vector<32x1xf32>
    %187 = arith.divf %185, %186 : vector<32x1xf32>
    %188 = vector.broadcast %180 : vector<32x1xf32> to vector<32x32xf32>
    %189 = arith.subf %176, %188 : vector<32x32xf32>
    %cst_57 = arith.constant 9.99999974E-6 : f32
    %190 = vector.broadcast %cst_57 : f32 to vector<32x1xf32>
    %191 = arith.addf %187, %190 : vector<32x1xf32>
    %192 = math.rsqrt %191 : vector<32x1xf32>
    %193 = vector.broadcast %192 : vector<32x1xf32> to vector<32x32xf32>
    %194 = arith.mulf %189, %193 : vector<32x32xf32>
    %195 = vector.broadcast %123 : vector<1x32xf32> to vector<32x32xf32>
    %196 = arith.mulf %194, %195 : vector<32x32xf32>
    %197 = vector.broadcast %124 : vector<1x32xf32> to vector<32x32xf32>
    %198 = arith.addf %196, %197 : vector<32x32xf32>
    %199 = arith.truncf %198 : vector<32x32xf32> to vector<32x32xbf16>
    %c1_58 = arith.constant 1 : index
    %c0_59 = arith.constant 0 : index
    %c0_60 = arith.constant 0 : index
    %200 = vector.load %arg5[%c1_58, %c0_59, %c0_60] : memref<2x32x128xbf16, #tpu.memory_space<vmem>>, vector<1x32x128xbf16>
    %201 = vector.shape_cast %200 : vector<1x32x128xbf16> to vector<32x128xbf16>
    %cst_61 = arith.constant dense<0.000000e+00> : vector<32x128xf32>
    %202 = tpu.matmul %199, %201, %cst_61 {dimension_numbers = #tpu.dot_dimension_numbers<[1], [0], [0], [1], [0, 0, 1, 1], [], []>} : vector<32x32xbf16>, vector<32x128xbf16>, vector<32x128xf32> -> vector<32x128xf32>
    %203 = vector.broadcast %125 : vector<1x128xf32> to vector<32x128xf32>
    %204 = arith.addf %202, %203 : vector<32x128xf32>
    %cst_62 = arith.constant 0.000000e+00 : f32
    %205 = vector.broadcast %cst_62 : f32 to vector<32x128xf32>
    %206 = arith.maximumf %204, %205 : vector<32x128xf32>
    %207 = arith.truncf %206 : vector<32x128xf32> to vector<32x128xbf16>
    %c1_63 = arith.constant 1 : index
    %c0_64 = arith.constant 0 : index
    %c0_65 = arith.constant 0 : index
    %208 = vector.load %arg6[%c1_63, %c0_64, %c0_65] : memref<2x128x32xbf16, #tpu.memory_space<vmem>>, vector<1x128x32xbf16>
    %209 = vector.shape_cast %208 : vector<1x128x32xbf16> to vector<128x32xbf16>
    %cst_66 = arith.constant dense<0.000000e+00> : vector<32x32xf32>
    %210 = tpu.matmul %207, %209, %cst_66 {dimension_numbers = #tpu.dot_dimension_numbers<[1], [0], [0], [1], [0, 0, 1, 1], [], []>} : vector<32x128xbf16>, vector<128x32xbf16>, vector<32x32xf32> -> vector<32x32xf32>
    %211 = vector.broadcast %126 : vector<1x32xf32> to vector<32x32xf32>
    %212 = arith.addf %210, %211 : vector<32x32xf32>
    %213 = arith.addf %212, %198 : vector<32x32xf32>
    %cst_67 = arith.constant dense<0.000000e+00> : vector<32xf32>
    %214 = vector.multi_reduction <add>, %213, %cst_67 [1] : vector<32x32xf32> to vector<32xf32>
    %215 = vector.shape_cast %214 : vector<32xf32> to vector<32x1xf32>
    %cst_68 = arith.constant 3.200000e+01 : f32
    %216 = vector.broadcast %cst_68 : f32 to vector<32x1xf32>
    %217 = arith.divf %215, %216 : vector<32x1xf32>
    %218 = vector.broadcast %217 : vector<32x1xf32> to vector<32x32xf32>
    %219 = arith.subf %213, %218 : vector<32x32xf32>
    %220 = arith.mulf %219, %219 : vector<32x32xf32>
    %cst_69 = arith.constant dense<0.000000e+00> : vector<32xf32>
    %221 = vector.multi_reduction <add>, %220, %cst_69 [1] : vector<32x32xf32> to vector<32xf32>
    %222 = vector.shape_cast %221 : vector<32xf32> to vector<32x1xf32>
    %cst_70 = arith.constant 3.200000e+01 : f32
    %223 = vector.broadcast %cst_70 : f32 to vector<32x1xf32>
    %224 = arith.divf %222, %223 : vector<32x1xf32>
    %225 = vector.broadcast %217 : vector<32x1xf32> to vector<32x32xf32>
    %226 = arith.subf %213, %225 : vector<32x32xf32>
    %cst_71 = arith.constant 9.99999974E-6 : f32
    %227 = vector.broadcast %cst_71 : f32 to vector<32x1xf32>
    %228 = arith.addf %224, %227 : vector<32x1xf32>
    %229 = math.rsqrt %228 : vector<32x1xf32>
    %230 = vector.broadcast %229 : vector<32x1xf32> to vector<32x32xf32>
    %231 = arith.mulf %226, %230 : vector<32x32xf32>
    %232 = vector.broadcast %127 : vector<1x32xf32> to vector<32x32xf32>
    %233 = arith.mulf %231, %232 : vector<32x32xf32>
    %234 = vector.broadcast %128 : vector<1x32xf32> to vector<32x32xf32>
    %235 = arith.addf %233, %234 : vector<32x32xf32>
    %236 = arith.truncf %235 : vector<32x32xf32> to vector<32x32xbf16>
    %c0_72 = arith.constant 0 : index
    %c0_73 = arith.constant 0 : index
    %237 = vector.load %arg8[%c0_72, %c0_73] : memref<32x128xbf16, #tpu.memory_space<vmem>>, vector<32x128xbf16>
    %cst_74 = arith.constant dense<0.000000e+00> : vector<32x128xf32>
    %238 = tpu.matmul %236, %237, %cst_74 {dimension_numbers = #tpu.dot_dimension_numbers<[1], [0], [0], [1], [0, 0, 1, 1], [], []>} : vector<32x32xbf16>, vector<32x128xbf16>, vector<32x128xf32> -> vector<32x128xf32>
    %c0_75 = arith.constant 0 : index
    %c0_76 = arith.constant 0 : index
    %239 = vector.load %arg9[%c0_75, %c0_76] : memref<1x128xf32, #tpu.memory_space<vmem>>, vector<1x128xf32>
    %240 = vector.broadcast %239 : vector<1x128xf32> to vector<32x128xf32>
    %241 = arith.addf %238, %240 : vector<32x128xf32>
    %242 = arith.truncf %241 : vector<32x128xf32> to vector<32x128xbf16>
    %c0_77 = arith.constant 0 : index
    %c0_78 = arith.constant 0 : index
    %243 = vector.load %arg10[%c0_77, %c0_78] : memref<32x128xbf16, #tpu.memory_space<vmem>>, vector<32x128xbf16>
    tpu.vector_store %arg10[%c0_77, %c0_78], %242 {strides = array<i32>} : memref<32x128xbf16, #tpu.memory_space<vmem>>, vector<32x128xbf16>,
    return
  }
  func.func @transform_0(%arg0: i32) -> (i32, i32) {
    %c0_i32 = arith.constant 0 : i32
    %c0_i32_0 = arith.constant 0 : i32
    return %arg0, %c0_i32 : i32, i32
  }
  func.func @transform_1(%arg0: i32) -> (i32, i32) {
    %c0_i32 = arith.constant 0 : i32
    %c0_i32_0 = arith.constant 0 : i32
    %c0_i32_1 = arith.constant 0 : i32
    return %c0_i32, %c0_i32_0 : i32, i32
  }
  func.func @transform_2(%arg0: i32) -> (i32, i32) {
    %c0_i32 = arith.constant 0 : i32
    %c0_i32_0 = arith.constant 0 : i32
    %c0_i32_1 = arith.constant 0 : i32
    return %c0_i32, %c0_i32_0 : i32, i32
  }
  func.func @transform_3(%arg0: i32) -> (i32, i32, i32) {
    %c0_i32 = arith.constant 0 : i32
    %c0_i32_0 = arith.constant 0 : i32
    %c0_i32_1 = arith.constant 0 : i32
    %c0_i32_2 = arith.constant 0 : i32
    return %c0_i32, %c0_i32_0, %c0_i32_1 : i32, i32, i32
  }
  func.func @transform_4(%arg0: i32) -> (i32, i32, i32) {
    %c0_i32 = arith.constant 0 : i32
    %c0_i32_0 = arith.constant 0 : i32
    %c0_i32_1 = arith.constant 0 : i32
    %c0_i32_2 = arith.constant 0 : i32
    return %c0_i32, %c0_i32_0, %c0_i32_1 : i32, i32, i32
  }
  func.func @transform_5(%arg0: i32) -> (i32, i32, i32) {
    %c0_i32 = arith.constant 0 : i32
    %c0_i32_0 = arith.constant 0 : i32
    %c0_i32_1 = arith.constant 0 : i32
    %c0_i32_2 = arith.constant 0 : i32
    return %c0_i32, %c0_i32_0, %c0_i32_1 : i32, i32, i32
  }
  func.func @transform_6(%arg0: i32) -> (i32, i32, i32) {
    %c0_i32 = arith.constant 0 : i32
    %c0_i32_0 = arith.constant 0 : i32
    %c0_i32_1 = arith.constant 0 : i32
    %c0_i32_2 = arith.constant 0 : i32
    return %c0_i32, %c0_i32_0, %c0_i32_1 : i32, i32, i32
  }
  func.func @transform_7(%arg0: i32) -> (i32, i32) {
    %c0_i32 = arith.constant 0 : i32
    %c0_i32_0 = arith.constant 0 : i32
    %c0_i32_1 = arith.constant 0 : i32
    return %c0_i32, %c0_i32_0 : i32, i32
  }
  func.func @transform_8(%arg0: i32) -> (i32, i32) {
    %c0_i32 = arith.constant 0 : i32
    %c0_i32_0 = arith.constant 0 : i32
    %c0_i32_1 = arith.constant 0 : i32
    return %c0_i32, %c0_i32_0 : i32, i32
  }
  func.func @transform_9(%arg0: i32) -> (i32, i32) {
    %c0_i32 = arith.constant 0 : i32
    %c0_i32_0 = arith.constant 0 : i32
    return %arg0, %c0_i32 : i32, i32
  }
}

</mosaic_0001>

<bundles_post_ra>
// kernel: _planner_forward_jit.1
= control target key start
LH: loop header
LB: loop body
LE: loop exit
PB: predicated region body
PF: predicated region fallthrough
CT: control target
= control target key end

     0   :  { %s2782_s30 = smov 0   ;;  %s3231_s0 = inlined_call_operand.vmem [shape: bf16[64,128], index: 0, kind: input, shape index: {}]   ;;  %s3232_s1 = inlined_call_operand.vmem [shape: f32[32,32], index: 1, kind: input, shape index: {}]   ;;  %s3233_s2 = inlined_call_operand.vmem [shape: bf16[128,32], index: 2, kind: input, shape index: {}]   ;;  %s3234_s3 = inlined_call_operand.vmem [shape: bf16[2,32,192], index: 3, kind: input, shape index: {}]   ;;  %s3235_s4 = inlined_call_operand.vmem [shape: bf16[2,32,128], index: 4, kind: input, shape index: {}]   ;;  %s3236_s5 = inlined_call_operand.vmem [shape: bf16[2,128,32], index: 5, kind: input, shape index: {}]   ;;  %s3237_s6 = inlined_call_operand.vmem [shape: f32[2,8,128], index: 6, kind: input, shape index: {}]   ;;  %s3238_s7 = inlined_call_operand.vmem [shape: bf16[32,128], index: 7, kind: input, shape index: {}]   ;;  %s3239_s8 = inlined_call_operand.vmem [shape: f32[1,128], index: 8, kind: input, shape index: {}]   ;;  %s3240_s9 = inlined_call_operand.vmem [shape: bf16[64,128], index: 9, kind: output, shape index: {}]  }
   0x1 LB: > { %s2208_s10 = sadd.s32 4294967295, %s2726_s30   ;;  %p2212_p0 = scmp.ge.s32.totalorder %s2726_s30, 1  ;;  %s2726_s30 = sphi %s2782_s30, %s19_s30  }
   0x2   : > { %p288_p1 = scmp.lt.s32.totalorder %s2726_s30, 3 }
   0x4   : > { %p289_p2 = pnand %p2212_p0, %p288_p1 }
   0x5   : > { %v2580_v0 = vld [vmem:[%s3233_s2] sm:$0xff] (!%p289_p2)   ;;  %s2213_s13 = sshll.u32 (!%p289_p2), %s2208_s10, 2  ;;  %v2581_v1 = vld [vmem:[%s3233_s2 + $0x8] sm:$0xff] (!%p289_p2)   ;;  %v2582_v2 = vld [vmem:[%s3233_s2 + $0x10] sm:$0xff] (!%p289_p2)   ;;  %v2728_v14 = vmov (!%p289_p2), 0   ;;  %vm497_vm0 = vcmask (!%p289_p2), 261120  }
   0x6   : > { %292 = sbr.rel (%p289_p2) target bundleno = 4911 (0x132f), region = 56  ;;  %p325_p3 = scmp.lt.s32.totalorder (!%p289_p2), %s2213_s13, 7  ;;  %2404 = vmatprep.subr.bf16.mxu0 (!%p289_p2), %v2580_v0  ;;  %v2583_v3 = vld [vmem:[%s3233_s2 + $0x18] sm:$0xff] (!%p289_p2)   ;;  %v2584_v5 = vld [vmem:[%s3233_s2 + $0x20] sm:$0xff] (!%p289_p2)   ;;  %v2585_v8 = vld [vmem:[%s3233_s2 + $0x28] sm:$0xff] (!%p289_p2)   ;;  %536 = vmatprep.mubr.bf16.mxu1 (!%p289_p2), %v2728_v14 }
   0x7   : > { %2405 = vmatpush3.bf16.msra.mxu0 (!%p289_p2), %v2580_v0  ;;  %v2590_v6 = vld [vmem:[%s3234_s3 + $0x4] ss:$8 sps:$4 sm:$0xff] (!%p289_p2)   ;;  %v2592_v7 = vld [vmem:[%s3234_s3] ss:$8 sps:$4 sm:$0xff] (!%p289_p2)   ;;  %v2586_v9 = vld [vmem:[%s3233_s2 + $0x30] sm:$0xff] (!%p289_p2)   ;;  %s2730_s23 = smov (!%p289_p2), 64  }
   0x8   : > { %2406 = vmatprep.subr.bf16.mxu0 (!%p289_p2), %v2581_v1  ;;  %504 = vmatprep.subr.bf16.mxu1 (!%p289_p2), %v2590_v6  ;;  %v2587_v10 = vld [vmem:[%s3233_s2 + $0x38] sm:$0xff] (!%p289_p2)   ;;  %s2731_s24 = smov (!%p289_p2), 96   ;;  %v2879_v43 = vld [vmem:[%s3232_s1 + $0x10] sm:$0xff] (!%p289_p2)  ;;  %v2884_v44 = vld [vmem:[%s3232_s1] sm:$0xff] (!%p289_p2) }
   0x9   : > { %505 = vmatpush1.bf16.msra.mxu1 (!%p289_p2), %v2592_v7  ;;  %v2593_v12 = vld [vmem:[%s3234_s3 + $0x14] ss:$8 sps:$4 sm:$0xff] (!%p289_p2)   ;;  %v2595_v13 = vld [vmem:[%s3234_s3 + $0x10] ss:$8 sps:$4 sm:$0xff] (!%p289_p2)   ;;  %v2895_v49 = vld [vmem:[%s3232_s1 + $0x8] sm:$0xff] (!%p289_p2) }
   0xa   : > { %506 = vmatprep.subr.bf16.mxu1 (!%p289_p2), %v2593_v12  ;;  %v2890_v48 = vld [vmem:[%s3232_s1 + $0x18] sm:$0xff] (!%p289_p2) }
   0xb   : > { %2407 = vmatpush3.bf16.msra.mxu0 (!%p289_p2), %v2581_v1 }
   0xc   : > { %2408 = vmatprep.subr.bf16.mxu0 (!%p289_p2), %v2582_v2 }
   0xd   : > { %s3242_s13 = smov (!%p325_p3, %s2213_s13), 7  ;;  %507 = vmatpush1.bf16.msra.mxu1 %v2595_v13 }
   0xe   : > { %s2214_s18 = sshll.u32 %s3242_s13, 2 }
   0xf   : > { %s328_s21 = scalar_lea.vmem %s3231_s0, %s2214_s18  ;;  %2409 = vmatpush3.bf16.msra.mxu0 %v2582_v2  ;;  %s334_s27 = scalar_lea.vmem %s3240_s9, %s2214_s18 }
  0x10   : > { %v2588_v4 = vld [vmem:[%s328_s21] sm:$0xff]   ;;  %2410 = vmatprep.subr.bf16.mxu0 %v2583_v3  ;;  %v2589_v11 = vld [vmem:[%s328_s21 + $0x8] sm:$0xff]   ;;  %s2729_s21 = smov 32  }
  0x11   : > { %2420 = vmatprep.mubr.bf16.mxu0 %v2588_v4 }
  0x13   : > { %2411 = vmatpush3.bf16.msra.mxu0 %v2583_v3 }
  0x14   : > { %2412 = vmatprep.subr.bf16.mxu0 %v2584_v5 }
  0x17   : > { %2413 = vmatpush3.bf16.msra.mxu0 %v2584_v5 }
  0x18   : > { %2414 = vmatprep.subr.bf16.mxu0 %v2585_v8 }
  0x1b   : > { %2415 = vmatpush3.bf16.msra.mxu0 %v2585_v8 }
  0x1c   : > { %2416 = vmatprep.subr.bf16.mxu0 %v2586_v9 }
  0x1f   : > { %2417 = vmatpush3.bf16.msra.mxu0 %v2586_v9 }
  0x20   : > { %2418 = vmatprep.subr.bf16.mxu0 %v2587_v10 }
  0x23   : > { %2419 = vmatpush3.bf16.msra.mxu0 %v2587_v10 }
  0x26   : > { %2421 = vmatmul.mubr.bf16.vlgmr.msra.gmra.mrb[0].mxu0 %v2589_v11 }
  0xf9   : > { %v2835_v15 = vpop.f32.mrb[0].mxu0 }
  0xfa   : > { %v2837_v16 = vpop.f32.mrb[1].mxu0 }
  0xfb   : > { %v2839_v17 = vpop.f32.mrb[2].mxu0 }
  0xfc   : > { %v472_v18 = vpack.c.bf16 %v2839_v17, %v2835_v15  ;;  %v2843_v19 = vpop.f32.mrb[3].mxu0 }
  0xfd   : > { %v471_v20 = vpack.c.bf16 %v2843_v19, %v2837_v16 }
  0xff   : > { %2231 = vmatmul.mubr.msk.bf16.vlgmr.msra.gmra.mrb[0].mxu1 %vm497_vm0, %v471_v20 }
 0x100   : > { %546 = vmatprep.mubr.bf16.mxu1 %v2728_v14 }
 0x107   : > { %2232 = vmatmul.mubr.msk.bf16.gmra.mrb[4].mxu1 %vm497_vm0, %v472_v18 }
 0x1d2   : > { %v538_v21 = vpop.f32.mrb[0].mxu1 }
 0x1d3   : > { %v540_v22 = vpop.f32.mrb[1].mxu1 }
 0x1d4   : > { %v542_v23 = vpop.f32.mrb[2].mxu1 }
 0x1d5   : > { %v557_v24 = vpack.c.bf16 %v542_v23, %v538_v21  ;;  %v544_v25 = vpop.f32.mrb[3].mxu1 }
 0x1d6   : > { %v2850_v26 = vpack.c.bf16 %v544_v25, %v540_v22 }
 0x1d7   : > { %678 = vrot.lane.b32.xlu1 %v557_v24, %s2729_s21  ;;  %563 = vrot.lane.b32.xlu0 %v557_v24, %s2730_s23 }
 0x1d8   : > { %2428 = vmatprep.mubr.msk.bf16.mxu1 %vm497_vm0, %v557_v24  ;;  %2448 = vmatprep.subr.bf16.mxu0 %v2850_v26 }
 0x1d9   : > { %2449 = vmatpush3.bf16.msra.mxu0 %v2850_v26 }
 0x1da   : > { %v548_v27 = vpop.f32.mrb[4].mxu1 }
 0x1db   : > { %v550_v28 = vpop.f32.mrb[5].mxu1 }
 0x1dc   : > { %v552_v29 = vpop.f32.mrb[6].mxu1 }
 0x1dd   : > { %v558_v30 = vpack.c.bf16 %v552_v29, %v548_v27  ;;  %v554_v31 = vpop.f32.mrb[7].mxu1 }
 0x1de   : > { %v2857_v32 = vpack.c.bf16 %v554_v31, %v550_v28 }
 0x1df   : > { %680 = vrot.lane.b32.xlu1 %v558_v30, %s2729_s21  ;;  %565 = vrot.lane.b32.xlu0 %v558_v30, %s2730_s23 }
 0x1e0   : > { %2450 = vmatprep.subr.bf16.mxu0 %v2857_v32 }
 0x1e1   : > { %2451 = vmatpush3.bf16.msra.mxu0 %v2857_v32 }
 0x1e3   : > { %676 = vrot.lane.b32.xlu1 %v558_v30, %s2731_s24  ;;  %674 = vrot.lane.b32.xlu0 %v557_v24, %s2731_s24 }
 0x249   : > { %v564_v33 = vpop.permute.xlu0 %563  ;;  %v679_v37 = vpop.permute.xlu1 %678 }
 0x24a   : > { %v574_v34 = vsel %vm497_vm0, %v564_v33, 0  ;;  %2560 = vmatprep.subr.msk.bf16.mxu1 %vm497_vm0, %v564_v33  ;;  %v689_v38 = vsel %vm497_vm0, %v679_v37, 0 }
 0x24b   : > { %2425 = vmatpush3.bf16.xpose.msra.mxu1 %v574_v34 }
 0x251   : > { %v566_v35 = vpop.permute.xlu0 %565  ;;  %v681_v40 = vpop.permute.xlu1 %680 }
 0x252   : > { %v577_v36 = vsel %vm497_vm0, %v566_v35, 0  ;;  %2561 = vmatprep.subr.msk.bf16.mxu1 %vm497_vm0, %v566_v35  ;;  %v692_v41 = vsel %vm497_vm0, %v681_v40, 0 }
 0x253   : > { %2427 = vmatpush3.bf16.xpose.msra.mxu1 %v577_v36 }
 0x254   : > { %2562 = vmatprep.subr.msk.bf16.mxu1 %vm497_vm0, %v679_v37 }
 0x255   : > { %v675_v39 = vpop.permute.xlu0 %674  ;;  %v677_v42 = vpop.permute.xlu1 %676 }
 0x25a   : > { %2429 = vmatmul.mubr.msk.bf16.vlgmr.msra.gmra.mrb[8].mxu1 %vm497_vm0, %v558_v30 }
 0x25b   : > { %2433 = vmatpush3.bf16.xpose.msra.mxu1 %v689_v38  ;;  %2436 = vmatprep.mubr.msk.bf16.mxu1 %vm497_vm0, %v675_v39 }
 0x25c   : > { %2563 = vmatprep.subr.msk.bf16.mxu1 %vm497_vm0, %v681_v40 }
 0x263   : > { %2435 = vmatpush3.bf16.xpose.msra.mxu1 %v692_v41 }
 0x26a   : > { %2437 = vmatmul.mubr.msk.bf16.vlgmr.msra.gmra.mrb[12].mxu1 %vm497_vm0, %v677_v42 }
 0x32d   : > { %v2430_v45 = vpop.f32.mrb[8].mxu1 }
 0x32e   : > { %v622_v46 = vadd.f32 %v2430_v45, %v2879_v43  ;;  %v613_v47 = vpop.f32.mrb[9].mxu1 }
 0x32f   : > { %v614_v50 = vadd.f32 %v613_v47, %v2884_v44  ;;  %v2431_v51 = vpop.f32.mrb[10].mxu1 }
 0x330   : > { %v616_v52 = vpop.f32.mrb[11].mxu1  ;;  %v634_v53 = vsel %vm497_vm0, %v622_v46, -inf  ;;  %v625_v54 = vadd.f32 %v2431_v51, %v2890_v48 }
 0x331   : > { %v617_v55 = vadd.f32 %v616_v52, %v2895_v49  ;;  %635 = vmax.xlane.f32.xlu1 %v634_v53  ;;  %v628_v56 = vsel %vm497_vm0, %v614_v50, -inf }
 0x332   : > { %629 = vmax.xlane.f32.xlu0 %v628_v56  ;;  %v637_v58 = vsel %vm497_vm0, %v625_v54, -inf }
 0x333   : > { %v631_v57 = vsel %vm497_vm0, %v617_v55, -inf }
 0x335   : > { %632 = vmax.xlane.f32.xlu1 %v631_v57 }
 0x336   : > { %638 = vmax.xlane.f32.xlu0 %v637_v58 }
 0x33d   : > { %v2438_v59 = vpop.f32.mrb[12].mxu1 }
 0x33e   : > { %v737_v60 = vadd.f32 %v2438_v59, %v2879_v43  ;;  %v728_v61 = vpop.f32.mrb[13].mxu1 }
 0x33f   : > { %v729_v62 = vadd.f32 %v728_v61, %v2884_v44  ;;  %v2439_v63 = vpop.f32.mrb[14].mxu1 }
 0x340   : > { %v731_v0 = vpop.f32.mrb[15].mxu1  ;;  %v749_v1 = vsel %vm497_vm0, %v737_v60, -inf  ;;  %v740_v4 = vadd.f32 %v2439_v63, %v2890_v48 }
 0x341   : > { %v732_v2 = vadd.f32 %v731_v0, %v2895_v49  ;;  %750 = vmax.xlane.f32.xlu1 %v749_v1  ;;  %v743_v3 = vsel %vm497_vm0, %v729_v62, -inf }
 0x342   : > { %744 = vmax.xlane.f32.xlu0 %v743_v3  ;;  %v752_v6 = vsel %vm497_vm0, %v740_v4, -inf }
 0x343   : > { %v746_v5 = vsel %vm497_vm0, %v732_v2, -inf }
 0x346   : > { %747 = vmax.xlane.f32.xlu0 %v746_v5 }
 0x34a   : > { %753 = vmax.xlane.f32.xlu0 %v752_v6 }
 0x3be   : > { %v636_v7 = vpop.xlane.xlu1 %635 }
 0x3bf   : > { %v642_v8 = vsub.f32 %v622_v46, %v636_v7  ;;  %v630_v9 = vpop.xlane.xlu0 %629 }
 0x3c0   : > { %v640_v10 = vsub.f32 %v614_v50, %v630_v9 }
 0x3c1   : > { %v648_v11 = vmul.f32 1.442695, %v642_v8 }
 0x3c2   : > { %v644_v12 = vmul.f32 1.442695, %v640_v10  ;;  %v633_v13 = vpop.xlane.xlu1 %632 }
 0x3c3   : > { %2624 = vpow2.f32 %v648_v11  ;;  %v641_v18 = vsub.f32 %v617_v55, %v633_v13  ;;  %v639_v20 = vpop.xlane.xlu0 %638 }
 0x3c4   : > { %v643_v21 = vsub.f32 %v625_v54, %v639_v20  ;;  %2626 = vpow2.f32 %v644_v12 }
 0x3c5   : > { %v646_v22 = vmul.f32 1.442695, %v641_v18 }
 0x3c6   : > { %v650_v23 = vmul.f32 1.442695, %v643_v21 }
 0x3c8   : > { %2628 = vpow2.f32 %v650_v23 }
 0x3c9   : > { %2630 = vpow2.f32 %v646_v22 }
 0x3cd   : > { %v2625_v24 = vpop.eup %2624 }
 0x3ce   : > { %v751_v25 = vpop.xlane.xlu1 %750  ;;  %v658_v27 = vsel %vm497_vm0, %v2625_v24, 0.0  ;;  %v2627_v28 = vpop.eup %2626 }
 0x3cf   : > { %v757_v29 = vsub.f32 %v737_v60, %v751_v25  ;;  %659 = vadd.xlane.f32.xlu1 %v658_v27  ;;  %v745_v30 = vpop.xlane.xlu0 %744  ;;  %v652_v36 = vsel %vm497_vm0, %v2627_v28, 0.0 }
 0x3d0   : > { %v755_v31 = vsub.f32 %v729_v62, %v745_v30 }
 0x3d1   : > { %v763_v33 = vmul.f32 1.442695, %v757_v29 }
 0x3d2   : > { %v2629_v34 = vpop.eup %2628  ;;  %v759_v35 = vmul.f32 1.442695, %v755_v31 }
 0x3d3   : > { %2632 = vpow2.f32 %v763_v33  ;;  %653 = vadd.xlane.f32.xlu1 %v652_v36  ;;  %v748_v37 = vpop.xlane.xlu0 %747  ;;  %v661_v38 = vsel %vm497_vm0, %v2629_v34, 0.0  ;;  %v2631_v39 = vpop.eup %2630  ;;  %v907_v33 = vlaneseq  ;;  %v2934_v36 = vld [vmem:[%s3237_s6] sm:$0xff] }
 0x3d4   : > { %662 = vadd.xlane.f32.xlu0 %v661_v38  ;;  %2634 = vpow2.f32 %v759_v35  ;;  %v756_v40 = vsub.f32 %v732_v2, %v748_v37  ;;  %v655_v42 = vsel %vm497_vm0, %v2631_v39, 0.0 }
 0x3d6   : > { %v761_v46 = vmul.f32 1.442695, %v756_v40 }
 0x3d7   : > { %v754_v41 = vpop.xlane.xlu0 %753 }
 0x3d8   : > { %v758_v45 = vsub.f32 %v740_v4, %v754_v41  ;;  %656 = vadd.xlane.f32.xlu0 %v655_v42 }
 0x3da   : > { %v765_v47 = vmul.f32 1.442695, %v758_v45 }
 0x3dc   : > { %2636 = vpow2.f32 %v765_v47 }
 0x3dd   : > { %v2633_v50 = vpop.eup %2632  ;;  %2638 = vpow2.f32 %v761_v46 }
 0x3de   : > { %v773_v51 = vsel %vm497_vm0, %v2633_v50, 0.0  ;;  %v2635_v52 = vpop.eup %2634 }
 0x3df   : > { %774 = vadd.xlane.f32.xlu1 %v773_v51  ;;  %v767_v53 = vsel %vm497_vm0, %v2635_v52, 0.0 }
 0x3e3   : > { %768 = vadd.xlane.f32.xlu1 %v767_v53 }
 0x3e6   : > { %v2637_v54 = vpop.eup %2636 }
 0x3e7   : > { %v776_v55 = vsel %vm497_vm0, %v2637_v54, 0.0  ;;  %v2639_v56 = vpop.eup %2638 }
 0x3e8   : > { %777 = vadd.xlane.f32.xlu0 %v776_v55  ;;  %v770_v57 = vsel %vm497_vm0, %v2639_v56, 0.0 }
 0x3ec   : > { %771 = vadd.xlane.f32.xlu0 %v770_v57 }
 0x3f4   : > { %791 = vrot.lane.b32.xlu1 %v2850_v26, %s2731_s24 }
 0x402   : > { %793 = vrot.lane.b32.xlu0 %v2857_v32, %s2731_s24 }
 0x45c   : > { %v660_v58 = vpop.xlane.xlu1 %659 }
 0x460   : > { %v654_v59 = vpop.xlane.xlu1 %653 }
 0x461   : > { %v663_v60 = vpop.xlane.xlu0 %662 }
 0x462   : > { %2640 = vrcp.f32 %v663_v60 }
 0x463   : > { %2642 = vrcp.f32 %v654_v59 }
 0x464   : > { %2644 = vrcp.f32 %v660_v58 }
 0x465   : > { %v657_v61 = vpop.xlane.xlu0 %656 }
 0x466   : > { %2646 = vrcp.f32 %v657_v61 }
 0x46c   : > { %v775_v62 = vpop.xlane.xlu1 %774  ;;  %v2641_v63 = vpop.eup %2640 }
 0x46d   : > { %v2643_v0 = vpop.eup %2642  ;;  %v671_v3 = vmul.f32 %v2641_v63, %v2629_v34  ;;  %v2928_v34 = vshrl.u32 %v907_v33, 7 }
 0x46e   : > { %v2645_v1 = vpop.eup %2644  ;;  %v668_v5 = vmul.f32 %v2643_v0, %v2627_v28 }
 0x46f   : > { %v670_v6 = vmul.f32 %v2645_v1, %v2625_v24  ;;  %v909_v35 = vsub.s32 0, %v2928_v34 }
 0x470   : > { %v2647_v2 = vpop.eup %2646  ;;  %v769_v4 = vpop.xlane.xlu1 %768 }
 0x471   : > { %v669_v26 = vmul.f32 %v2647_v2, %v2631_v39  ;;  %v673_v8 = vpack.c.bf16 %v671_v3, %v670_v6  ;;  %v910_v37 = vrot.slane %v2934_v36, %v909_v35 }
 0x473   : > { %v672_v7 = vpack.c.bf16 %v669_v26, %v668_v5 }
 0x474   : > { %v792_v32 = vpop.permute.xlu1 %791 }
 0x475   : > { %2440 = vmatprep.subr.bf16.mxu1 %v792_v32  ;;  %2452 = vmatprep.mubr.msk.bf16.mxu0 %vm497_vm0, %v672_v7  ;;  %v778_v9 = vpop.xlane.xlu0 %777 }
 0x476   : > { %2441 = vmatpush3.bf16.msra.mxu1 %v792_v32  ;;  %2453 = vmatmul.mubr.msk.bf16.vlgmr.msra.gmra.mrb[4].mxu0 %vm497_vm0, %v673_v8  ;;  %2648 = vrcp.f32 %v778_v9 }
 0x477   : > { %2650 = vrcp.f32 %v769_v4 }
 0x478   : > { %2652 = vrcp.f32 %v775_v62 }
 0x479   : > { %v772_v10 = vpop.xlane.xlu0 %771 }
 0x47a   : > { %2654 = vrcp.f32 %v772_v10 }
 0x47d   : > { %v794_v11 = vpop.permute.xlu0 %793 }
 0x47e   : > { %2442 = vmatprep.subr.bf16.mxu1 %v794_v11 }
 0x47f   : > { %2443 = vmatpush3.bf16.msra.mxu1 %v794_v11 }
 0x480   : > { %v2649_v12 = vpop.eup %2648 }
 0x481   : > { %v2651_v13 = vpop.eup %2650  ;;  %v786_v21 = vmul.f32 %v2649_v12, %v2637_v54  ;;  %v2596_v12 = vld [vmem:[%s3235_s4] sm:$0xff]  }
 0x482   : > { %v2653_v18 = vpop.eup %2652  ;;  %v783_v22 = vmul.f32 %v2651_v13, %v2635_v52  ;;  %2456 = vmatprep.subr.bf16.mxu1 %v2596_v12  ;;  %v2597_v13 = vld [vmem:[%s3235_s4 + $0x8] sm:$0xff]  }
 0x483   : > { %v785_v24 = vmul.f32 %v2653_v18, %v2633_v50  ;;  %v2598_v18 = vld [vmem:[%s3236_s5] sm:$0xff]  }
 0x484   : > { %v2655_v20 = vpop.eup %2654  ;;  %2464 = vmatprep.subr.bf16.mxu0 %v2598_v18 }
 0x485   : > { %v784_v23 = vmul.f32 %v2655_v20, %v2639_v56  ;;  %v788_v27 = vpack.c.bf16 %v786_v21, %v785_v24  ;;  %v2599_v20 = vld [vmem:[%s3236_s5 + $0x8] sm:$0xff]   ;;  %2465 = vmatpush3.bf16.msra.mxu0 %v2598_v18  ;;  %v2600_v21 = vld [vmem:[%s3236_s5 + $0x10] sm:$0xff]  }
 0x486   : > { %2466 = vmatprep.subr.bf16.mxu0 %v2599_v20  ;;  %v2603_v24 = vld [vmem:[%s3236_s5 + $0x28] sm:$0xff]  }
 0x487   : > { %v787_v25 = vpack.c.bf16 %v784_v23, %v783_v22  ;;  %v2601_v22 = vld [vmem:[%s3236_s5 + $0x18] sm:$0xff]   ;;  %v2602_v23 = vld [vmem:[%s3236_s5 + $0x20] sm:$0xff]  }
 0x489   : > { %2444 = vmatprep.mubr.msk.bf16.mxu1 %vm497_vm0, %v787_v25  ;;  %2467 = vmatpush3.bf16.msra.mxu0 %v2599_v20 }
 0x48a   : > { %2445 = vmatmul.mubr.msk.bf16.vlgmr.msra.gmra.mrb[16].mxu1 %vm497_vm0, %v788_v27  ;;  %2468 = vmatprep.subr.bf16.mxu0 %v2600_v21 }
 0x48b   : > { %2457 = vmatpush3.bf16.msra.mxu1 %v2596_v12 }
 0x48c   : > { %2458 = vmatprep.subr.bf16.mxu1 %v2597_v13 }
 0x48d   : > { %2469 = vmatpush3.bf16.msra.mxu0 %v2600_v21  ;;  %v1089_v21 = vsub.s32 4, %v2928_v34 }
 0x48e   : > { %2470 = vmatprep.subr.bf16.mxu0 %v2601_v22 }
 0x48f   : > { %2459 = vmatpush3.bf16.msra.mxu1 %v2597_v13 }
 0x491   : > { %2471 = vmatpush3.bf16.msra.mxu0 %v2601_v22  ;;  %v1090_v22 = vrot.slane %v2934_v36, %v1089_v21 }
 0x492   : > { %2472 = vmatprep.subr.bf16.mxu0 %v2602_v23 }
 0x495   : > { %2473 = vmatpush3.bf16.msra.mxu0 %v2602_v23 }
 0x496   : > { %2474 = vmatprep.subr.bf16.mxu0 %v2603_v24 }
 0x499   : > { %2475 = vmatpush3.bf16.msra.mxu0 %v2603_v24 }
 0x549   : > { %v2454_v28 = vpop.f32.mrb[4].mxu0 }
 0x54a   : > { %v892_v29 = vpop.f32.mrb[5].mxu0 }
 0x54b   : > { %v2455_v30 = vpop.f32.mrb[6].mxu0 }
 0x54c   : > { %v895_v31 = vpop.f32.mrb[7].mxu0 }
 0x55d   : > { %v2446_v38 = vpop.f32.mrb[16].mxu1 }
 0x55e   : > { %v901_v39 = vadd.f32 %v2454_v28, %v2446_v38  ;;  %v837_v40 = vpop.f32.mrb[17].mxu1 }
 0x55f   : > { %v893_v41 = vadd.f32 %v892_v29, %v837_v40  ;;  %v2447_v42 = vpop.f32.mrb[18].mxu1 }
 0x560   : > { %v913_v45 = vadd.f32 %v910_v37, %v901_v39  ;;  %v904_v46 = vadd.f32 %v2455_v30, %v2447_v42  ;;  %v840_v47 = vpop.f32.mrb[19].mxu1  ;;  %v974_v42 = vsub.s32 1, %v2928_v34 }
 0x561   : > { %v911_v50 = vadd.f32 %v910_v37, %v893_v41  ;;  %v896_v51 = vadd.f32 %v895_v31, %v840_v47 }
 0x562   : > { %v914_v52 = vadd.f32 %v910_v37, %v904_v46  ;;  %v917_v53 = vadd.f32 %v2835_v15, %v913_v45  ;;  %v975_v45 = vrot.slane %v2934_v36, %v974_v42  ;;  %v982_v46 = vsub.s32 2, %v2928_v34 }
 0x563   : > { %v912_v54 = vadd.f32 %v910_v37, %v896_v51  ;;  %v915_v55 = vadd.f32 %v911_v50, %v2837_v16 }
 0x564   : > { %v918_v56 = vadd.f32 %v2839_v17, %v914_v52  ;;  %v925_v60 = vsel %vm497_vm0, %v917_v53, 0.0 }
 0x565   : > { %v919_v57 = vsel %vm497_vm0, %v915_v55, 0.0  ;;  %v916_v58 = vadd.f32 %v912_v54, %v2843_v19  ;;  %v983_v54 = vrot.slane %v2934_v36, %v982_v46 }
 0x566   : > { %920 = vadd.xlane.f32.xlu1 %v919_v57  ;;  %v928_v61 = vsel %vm497_vm0, %v918_v56, 0.0 }
 0x567   : > { %v922_v59 = vsel %vm497_vm0, %v916_v58, 0.0 }
 0x568   : > { %923 = vadd.xlane.f32.xlu0 %v922_v59 }
 0x56a   : > { %926 = vadd.xlane.f32.xlu1 %v925_v60 }
 0x56c   : > { %929 = vadd.xlane.f32.xlu0 %v928_v61 }
 0x5f3   : > { %v921_v15 = vpop.xlane.xlu1 %920 }
 0x5f4   : > { %v932_v62 = vmul.f32 0.03125, %v921_v15 }
 0x5f5   : > { %v924_v63 = vpop.xlane.xlu0 %923 }
 0x5f6   : > { %v2947_v16 = vsub.f32 %v915_v55, %v932_v62  ;;  %v933_v17 = vmul.f32 0.03125, %v924_v63 }
 0x5f7   : > { %v927_v0 = vpop.xlane.xlu1 %926 }
 0x5f8   : > { %v2949_v1 = vsub.f32 %v916_v58, %v933_v17  ;;  %v934_v19 = vmul.f32 0.03125, %v927_v0  ;;  %v940_v2 = vmul.f32 %v2947_v16, %v2947_v16 }
 0x5f9   : > { %v930_v3 = vpop.xlane.xlu0 %929 }
 0x5fa   : > { %v2953_v4 = vsub.f32 %v917_v53, %v934_v19  ;;  %v935_v5 = vmul.f32 0.03125, %v930_v3  ;;  %v944_v26 = vsel %vm497_vm0, %v940_v2, 0.0  ;;  %v941_v6 = vmul.f32 %v2949_v1, %v2949_v1  ;;  %v2605_v19 = vld [vmem:[%s3236_s5 + $0x38] sm:$0xff]  }
 0x5fb   : > { %945 = vadd.xlane.f32.xlu1 %v944_v26  ;;  %v996_v2 = vsub.s32 3, %v2928_v34 }
 0x5fc   : > { %v2958_v7 = vsub.f32 %v918_v56, %v935_v5  ;;  %v947_v32 = vsel %vm497_vm0, %v941_v6, 0.0  ;;  %v942_v8 = vmul.f32 %v2953_v4, %v2953_v4 }
 0x5fd   : > { %948 = vadd.xlane.f32.xlu0 %v947_v32  ;;  %v997_v3 = vrot.slane %v2934_v36, %v996_v2 }
 0x5fe   : > { %v950_v9 = vsel %vm497_vm0, %v942_v8, 0.0  ;;  %v943_v10 = vmul.f32 %v2958_v7, %v2958_v7 }
 0x5ff   : > { %951 = vadd.xlane.f32.xlu1 %v950_v9 }
 0x600   : > { %v953_v11 = vsel %vm497_vm0, %v943_v10, 0.0 }
 0x601   : > { %954 = vadd.xlane.f32.xlu0 %v953_v11 }
 0x688   : > { %v946_v25 = vpop.xlane.xlu1 %945 }
 0x689   : > { %v956_v27 = vmul.f32 0.03125, %v946_v25 }
 0x68a   : > { %v949_v28 = vpop.xlane.xlu0 %948 }
 0x68b   : > { %v960_v29 = vadd.f32 1e-05, %v956_v27  ;;  %v957_v30 = vmul.f32 0.03125, %v949_v28 }
 0x68c   : > { %v952_v31 = vpop.xlane.xlu1 %951 }
 0x68d   : > { %2656 = vrsqrt.f32 %v960_v29  ;;  %v961_v33 = vadd.f32 1e-05, %v957_v30  ;;  %v958_v37 = vmul.f32 0.03125, %v952_v31 }
 0x68e   : > { %v955_v38 = vpop.xlane.xlu0 %954 }
 0x68f   : > { %2658 = vrsqrt.f32 %v961_v33  ;;  %v962_v39 = vadd.f32 1e-05, %v958_v37  ;;  %v959_v40 = vmul.f32 0.03125, %v955_v38 }
 0x691   : > { %2660 = vrsqrt.f32 %v962_v39  ;;  %v963_v41 = vadd.f32 1e-05, %v959_v40 }
 0x693   : > { %2662 = vrsqrt.f32 %v963_v41 }
 0x697   : > { %v2657_v47 = vpop.eup %2656 }
 0x698   : > { %v968_v50 = vmul.f32 %v2657_v47, %v2947_v16 }
 0x699   : > { %v2659_v51 = vpop.eup %2658 }
 0x69a   : > { %v969_v52 = vmul.f32 %v2659_v51, %v2949_v1  ;;  %v976_v53 = vmul.f32 %v975_v45, %v968_v50  ;;  %v2604_v1 = vld [vmem:[%s3236_s5 + $0x30] sm:$0xff]  }
 0x69b   : > { %v2661_v55 = vpop.eup %2660  ;;  %2476 = vmatprep.subr.bf16.mxu0 %v2604_v1 }
 0x69c   : > { %v970_v56 = vmul.f32 %v2661_v55, %v2953_v4  ;;  %v977_v57 = vmul.f32 %v975_v45, %v969_v52  ;;  %v984_v61 = vadd.f32 %v983_v54, %v976_v53  ;;  %2477 = vmatpush3.bf16.msra.mxu0 %v2604_v1 }
 0x69d   : > { %v2663_v58 = vpop.eup %2662  ;;  %2478 = vmatprep.subr.bf16.mxu0 %v2605_v19 }
 0x69e   : > { %v978_v59 = vmul.f32 %v975_v45, %v970_v56  ;;  %v971_v60 = vmul.f32 %v2663_v58, %v2958_v7  ;;  %v985_v15 = vadd.f32 %v983_v54, %v977_v57 }
 0x6a0   : > { %v979_v62 = vmul.f32 %v975_v45, %v971_v60  ;;  %v988_v63 = vpack.c.bf16 %v985_v15, %v984_v61  ;;  %v986_v16 = vadd.f32 %v983_v54, %v978_v59  ;;  %2479 = vmatpush3.bf16.msra.mxu0 %v2605_v19 }
 0x6a2   : > { %2460 = vmatprep.mubr.msk.bf16.mxu1 %vm497_vm0, %v988_v63  ;;  %v987_v17 = vadd.f32 %v983_v54, %v979_v62 }
 0x6a4   : > { %v989_v0 = vpack.c.bf16 %v987_v17, %v986_v16 }
 0x6a6   : > { %2461 = vmatmul.mubr.msk.bf16.vlgmr.msra.gmra.mrb[20].mxu1 %vm497_vm0, %v989_v0 }
 0x6a7   : > { %1327 = vmatprep.mubr.bf16.mxu1 %v2728_v14 }
 0x779   : > { %v2462_v4 = vpop.f32.mrb[20].mxu1 }
 0x77a   : > { %v1059_v5 = vadd.f32 %v2462_v4, %v997_v3  ;;  %v1050_v26 = vpop.f32.mrb[21].mxu1  ;;  %v2606_v4 = vld [vmem:[%s3234_s3 + $0x20] ss:$8 sps:$4 sm:$0xff]  }
 0x77b   : > { %v1051_v6 = vadd.f32 %v1050_v26, %v997_v3  ;;  %v2463_v7 = vpop.f32.mrb[22].mxu1  ;;  %v2609_v26 = vld [vmem:[%s3234_s3 + $0x30] ss:$8 sps:$4 sm:$0xff]  }
 0x77c   : > { %v1062_v32 = vadd.f32 %v2463_v7, %v997_v3  ;;  %v1053_v8 = vpop.f32.mrb[23].mxu1  ;;  %v1067_v10 = vmax.f32 %v1059_v5, 0.0  ;;  %v2611_v5 = vld [vmem:[%s3234_s3 + $0x34] ss:$8 sps:$4 sm:$0xff]  }
 0x77d   : > { %v1054_v9 = vadd.f32 %v1053_v8, %v997_v3  ;;  %v1065_v12 = vmax.f32 %v1051_v6, 0.0  ;;  %v2608_v3 = vld [vmem:[%s3234_s3 + $0x24] ss:$8 sps:$4 sm:$0xff]  }
 0x77e   : > { %v1068_v11 = vmax.f32 %v1062_v32, 0.0  ;;  %1295 = vmatprep.subr.bf16.mxu1 %v2608_v3 }
 0x77f   : > { %v1066_v13 = vmax.f32 %v1054_v9, 0.0  ;;  %1296 = vmatpush1.bf16.msra.mxu1 %v2606_v4 }
 0x780   : > { %v1070_v18 = vpack.c.bf16 %v1068_v11, %v1067_v10  ;;  %1297 = vmatprep.subr.bf16.mxu1 %v2611_v5 }
 0x781   : > { %v1069_v20 = vpack.c.bf16 %v1066_v13, %v1065_v12 }
 0x783   : > { %2480 = vmatprep.mubr.bf16.mxu0 %v1069_v20  ;;  %1298 = vmatpush1.bf16.msra.mxu1 %v2609_v26 }
 0x784   : > { %2481 = vmatmul.mubr.bf16.vlgmr.msra.gmra.mrb[8].mxu0 %v1070_v18 }
 0x857   : > { %v2482_v23 = vpop.f32.mrb[8].mxu0 }
 0x858   : > { %v1173_v24 = vpop.f32.mrb[9].mxu0  ;;  %v1182_v25 = vadd.f32 %v2482_v23, %v1090_v22  ;;  %v1246_v23 = vsub.s32 5, %v2928_v34 }
 0x859   : > { %v1174_v27 = vadd.f32 %v1173_v24, %v1090_v22  ;;  %v2483_v28 = vpop.f32.mrb[10].mxu0 }
 0x85a   : > { %v1176_v29 = vpop.f32.mrb[11].mxu0  ;;  %v1185_v30 = vadd.f32 %v2483_v28, %v1090_v22  ;;  %v1190_v39 = vadd.f32 %v1182_v25, %v986_v16  ;;  %v1247_v24 = vrot.slane %v2934_v36, %v1246_v23  ;;  %v1254_v25 = vsub.s32 6, %v2928_v34 }
 0x85b   : > { %v1177_v31 = vadd.f32 %v1176_v29, %v1090_v22  ;;  %v1188_v33 = vadd.f32 %v1174_v27, %v984_v61 }
 0x85c   : > { %v1191_v41 = vadd.f32 %v1185_v30, %v987_v17  ;;  %v1198_v45 = vsel %vm497_vm0, %v1190_v39, 0.0 }
 0x85d   : > { %v1192_v37 = vsel %vm497_vm0, %v1188_v33, 0.0  ;;  %v1189_v38 = vadd.f32 %v1177_v31, %v985_v15 }
 0x85e   : > { %1193 = vadd.xlane.f32.xlu1 %v1192_v37  ;;  %v1201_v47 = vsel %vm497_vm0, %v1191_v41, 0.0 }
 0x85f   : > { %v1195_v40 = vsel %vm497_vm0, %v1189_v38, 0.0 }
 0x860   : > { %1196 = vadd.xlane.f32.xlu0 %v1195_v40 }
 0x862   : > { %1199 = vadd.xlane.f32.xlu1 %v1198_v45 }
 0x864   : > { %1202 = vadd.xlane.f32.xlu0 %v1201_v47 }
 0x8eb   : > { %v1194_v50 = vpop.xlane.xlu1 %1193 }
 0x8ec   : > { %v1204_v51 = vmul.f32 0.03125, %v1194_v50 }
 0x8ed   : > { %v1197_v52 = vpop.xlane.xlu0 %1196 }
 0x8ee   : > { %v1208_v53 = vsub.f32 %v1188_v33, %v1204_v51  ;;  %v1205_v54 = vmul.f32 0.03125, %v1197_v52  ;;  %v1255_v33 = vrot.slane %v2934_v36, %v1254_v25 }
 0x8ef   : > { %v1200_v55 = vpop.xlane.xlu1 %1199 }
 0x8f0   : > { %v1209_v56 = vsub.f32 %v1189_v38, %v1205_v54  ;;  %v1206_v57 = vmul.f32 0.03125, %v1200_v55  ;;  %v1212_v58 = vmul.f32 %v1208_v53, %v1208_v53 }
 0x8f1   : > { %v1203_v59 = vpop.xlane.xlu0 %1202 }
 0x8f2   : > { %v1210_v60 = vsub.f32 %v1190_v39, %v1206_v57  ;;  %v1207_v61 = vmul.f32 0.03125, %v1203_v59  ;;  %v1216_v15 = vsel %vm497_vm0, %v1212_v58, 0.0  ;;  %v1213_v62 = vmul.f32 %v1209_v56, %v1209_v56 }
 0x8f3   : > { %1217 = vadd.xlane.f32.xlu1 %v1216_v15 }
 0x8f4   : > { %v1211_v63 = vsub.f32 %v1191_v41, %v1207_v61  ;;  %v1219_v16 = vsel %vm497_vm0, %v1213_v62, 0.0  ;;  %v1214_v17 = vmul.f32 %v1210_v60, %v1210_v60 }
 0x8f5   : > { %1220 = vadd.xlane.f32.xlu0 %v1219_v16 }
 0x8f6   : > { %v1222_v0 = vsel %vm497_vm0, %v1214_v17, 0.0  ;;  %v1215_v1 = vmul.f32 %v1211_v63, %v1211_v63 }
 0x8f7   : > { %1223 = vadd.xlane.f32.xlu1 %v1222_v0 }
 0x8f8   : > { %v1225_v19 = vsel %vm497_vm0, %v1215_v1, 0.0 }
 0x8f9   : > { %1226 = vadd.xlane.f32.xlu0 %v1225_v19 }
 0x980   : > { %v1218_v6 = vpop.xlane.xlu1 %1217 }
 0x981   : > { %v1228_v7 = vmul.f32 0.03125, %v1218_v6 }
 0x982   : > { %v1221_v32 = vpop.xlane.xlu0 %1220 }
 0x983   : > { %v1232_v8 = vadd.f32 1e-05, %v1228_v7  ;;  %v1229_v9 = vmul.f32 0.03125, %v1221_v32 }
 0x984   : > { %v1224_v10 = vpop.xlane.xlu1 %1223 }
 0x985   : > { %2664 = vrsqrt.f32 %v1232_v8  ;;  %v1233_v11 = vadd.f32 1e-05, %v1229_v9  ;;  %v1230_v12 = vmul.f32 0.03125, %v1224_v10 }
 0x986   : > { %v1227_v13 = vpop.xlane.xlu0 %1226 }
 0x987   : > { %2666 = vrsqrt.f32 %v1233_v11  ;;  %v1234_v18 = vadd.f32 1e-05, %v1230_v12  ;;  %v1231_v20 = vmul.f32 0.03125, %v1227_v13 }
 0x989   : > { %2668 = vrsqrt.f32 %v1234_v18  ;;  %v1235_v22 = vadd.f32 1e-05, %v1231_v20 }
 0x98b   : > { %2670 = vrsqrt.f32 %v1235_v22 }
 0x98f   : > { %v2665_v27 = vpop.eup %2664 }
 0x990   : > { %v1240_v28 = vmul.f32 %v2665_v27, %v1208_v53 }
 0x991   : > { %v2667_v29 = vpop.eup %2666 }
 0x992   : > { %v1248_v30 = vmul.f32 %v1247_v24, %v1240_v28  ;;  %v1241_v31 = vmul.f32 %v2667_v29, %v1209_v56 }
 0x993   : > { %v2669_v37 = vpop.eup %2668 }
 0x994   : > { %v1249_v38 = vmul.f32 %v1247_v24, %v1241_v31  ;;  %v1242_v40 = vmul.f32 %v2669_v37, %v1210_v60  ;;  %v3048_v45 = vadd.f32 %v1255_v33, %v1248_v30 }
 0x995   : > { %v2671_v39 = vpop.eup %2670 }
 0x996   : > { %v1243_v41 = vmul.f32 %v2671_v39, %v1211_v63  ;;  %v3050_v47 = vadd.f32 %v1255_v33, %v1249_v38  ;;  %v1250_v52 = vmul.f32 %v1247_v24, %v1242_v40 }
 0x998   : > { %v1262_v50 = vpack.c.bf16 %v3050_v47, %v3048_v45  ;;  %v1251_v51 = vmul.f32 %v1247_v24, %v1243_v41  ;;  %v3058_v36 = vadd.f32 %v1255_v33, %v1250_v52 }
 0x99a   : > { %2262 = vmatmul.mubr.msk.bf16.vlgmr.msra.gmra.mrb[24].mxu1 %vm497_vm0, %v1262_v50  ;;  %v3056_v53 = vadd.f32 %v1255_v33, %v1251_v51 }
 0x99b   : > { %1337 = vmatprep.mubr.bf16.mxu1 %v2728_v14 }
 0x99c   : > { %v1263_v54 = vpack.c.bf16 %v3056_v53, %v3058_v36 }
 0x9a2   : > { %2263 = vmatmul.mubr.msk.bf16.gmra.mrb[28].mxu1 %vm497_vm0, %v1263_v54 }
 0xa6d   : > { %v1329_v55 = vpop.f32.mrb[24].mxu1 }
 0xa6e   : > { %v1331_v56 = vpop.f32.mrb[25].mxu1 }
 0xa6f   : > { %v1333_v57 = vpop.f32.mrb[26].mxu1 }
 0xa70   : > { %v1348_v58 = vpack.c.bf16 %v1333_v57, %v1329_v55  ;;  %v1335_v59 = vpop.f32.mrb[27].mxu1 }
 0xa71   : > { %v3063_v60 = vpack.c.bf16 %v1335_v59, %v1331_v56 }
 0xa72   : > { %1354 = vrot.lane.b32.xlu1 %v1348_v58, %s2730_s23  ;;  %2488 = vmatprep.mubr.msk.bf16.mxu1 %vm497_vm0, %v1348_v58 }
 0xa75   : > { %v1339_v14 = vpop.f32.mrb[28].mxu1 }
 0xa76   : > { %1469 = vrot.lane.b32.xlu1 %v1348_v58, %s2729_s21  ;;  %v1341_v61 = vpop.f32.mrb[29].mxu1 }
 0xa77   : > { %v1343_v15 = vpop.f32.mrb[30].mxu1 }
 0xa78   : > { %v1349_v62 = vpack.c.bf16 %v1343_v15, %v1339_v14  ;;  %v1345_v63 = vpop.f32.mrb[31].mxu1 }
 0xa79   : > { %v3068_v16 = vpack.c.bf16 %v1345_v63, %v1341_v61 }
 0xa7a   : > { %1471 = vrot.lane.b32.xlu1 %v1349_v62, %s2729_s21  ;;  %1356 = vrot.lane.b32.xlu0 %v1349_v62, %s2730_s23 }
 0xa7e   : > { %1467 = vrot.lane.b32.xlu1 %v1349_v62, %s2731_s24  ;;  %1465 = vrot.lane.b32.xlu0 %v1348_v58, %s2731_s24 }
 0xae4   : > { %v1355_v17 = vpop.permute.xlu1 %1354 }
 0xae5   : > { %v1365_v0 = vsel %vm497_vm0, %v1355_v17, 0  ;;  %2564 = vmatprep.subr.msk.bf16.mxu1 %vm497_vm0, %v1355_v17 }
 0xae6   : > { %2485 = vmatpush3.bf16.xpose.msra.mxu1 %v1365_v0 }
 0xae8   : > { %v1470_v3 = vpop.permute.xlu1 %1469 }
 0xae9   : > { %v1480_v4 = vsel %vm497_vm0, %v1470_v3, 0 }
 0xaec   : > { %v1357_v1 = vpop.permute.xlu0 %1356  ;;  %v1472_v26 = vpop.permute.xlu1 %1471 }
 0xaed   : > { %v1368_v19 = vsel %vm497_vm0, %v1357_v1, 0  ;;  %2565 = vmatprep.subr.msk.bf16.mxu1 %vm497_vm0, %v1357_v1  ;;  %v1483_v6 = vsel %vm497_vm0, %v1472_v26, 0 }
 0xaee   : > { %2487 = vmatpush3.bf16.xpose.msra.mxu1 %v1368_v19 }
 0xaef   : > { %2566 = vmatprep.subr.msk.bf16.mxu1 %vm497_vm0, %v1470_v3 }
 0xaf0   : > { %v1466_v5 = vpop.permute.xlu0 %1465  ;;  %v1468_v7 = vpop.permute.xlu1 %1467 }
 0xaf5   : > { %2489 = vmatmul.mubr.msk.bf16.vlgmr.msra.gmra.mrb[32].mxu1 %vm497_vm0, %v1349_v62 }
 0xaf6   : > { %2493 = vmatpush3.bf16.xpose.msra.mxu1 %v1480_v4  ;;  %2496 = vmatprep.mubr.msk.bf16.mxu1 %vm497_vm0, %v1466_v5 }
 0xaf7   : > { %2567 = vmatprep.subr.msk.bf16.mxu1 %vm497_vm0, %v1472_v26 }
 0xafe   : > { %2495 = vmatpush3.bf16.xpose.msra.mxu1 %v1483_v6 }
 0xb05   : > { %2497 = vmatmul.mubr.msk.bf16.vlgmr.msra.gmra.mrb[36].mxu1 %vm497_vm0, %v1468_v7 }
 0xbc8   : > { %v2490_v32 = vpop.f32.mrb[32].mxu1 }
 0xbc9   : > { %v1404_v8 = vpop.f32.mrb[33].mxu1  ;;  %v1413_v33 = vadd.f32 %v2490_v32, %v2879_v43 }
 0xbca   : > { %v2491_v9 = vpop.f32.mrb[34].mxu1  ;;  %v1405_v28 = vadd.f32 %v1404_v8, %v2884_v44 }
 0xbcb   : > { %v1407_v10 = vpop.f32.mrb[35].mxu1  ;;  %v1416_v40 = vadd.f32 %v2491_v9, %v2890_v48 }
 0xbcc   : > { %v1419_v37 = vsel %vm497_vm0, %v1405_v28, -inf  ;;  %v1408_v38 = vadd.f32 %v1407_v10, %v2895_v49 }
 0xbcd   : > { %v1428_v50 = vsel %vm497_vm0, %v1416_v40, -inf }
 0xbce   : > { %v1422_v41 = vsel %vm497_vm0, %v1408_v38, -inf }
 0xbd8   : > { %v2498_v11 = vpop.f32.mrb[36].mxu1 }
 0xbd9   : > { %v1519_v12 = vpop.f32.mrb[37].mxu1  ;;  %v1528_v22 = vadd.f32 %v2498_v11, %v2879_v43 }
 0xbda   : > { %v1520_v13 = vadd.f32 %v1519_v12, %v2884_v44  ;;  %v2499_v18 = vpop.f32.mrb[38].mxu1  ;;  %v1425_v44 = vsel %vm497_vm0, %v1413_v33, -inf }
 0xbdb   : > { %v1522_v20 = vpop.f32.mrb[39].mxu1  ;;  %v1531_v30 = vadd.f32 %v2499_v18, %v2890_v48  ;;  %v1540_v31 = vsel %vm497_vm0, %v1528_v22, -inf }
 0xbdc   : > { %v1523_v24 = vadd.f32 %v1522_v20, %v2895_v49  ;;  %v1534_v27 = vsel %vm497_vm0, %v1520_v13, -inf }
 0xbdd   : > { %1535 = vmax.xlane.f32.xlu0 %v1534_v27  ;;  %v1543_v39 = vsel %vm497_vm0, %v1531_v30, -inf }
 0xbde   : > { %v1537_v29 = vsel %vm497_vm0, %v1523_v24, -inf }
 0xbdf   : > { %1538 = vmax.xlane.f32.xlu1 %v1537_v29 }
 0xbe1   : > { %1541 = vmax.xlane.f32.xlu0 %v1540_v31 }
 0xbe3   : > { %1420 = vmax.xlane.f32.xlu1 %v1419_v37 }
 0xbe5   : > { %1544 = vmax.xlane.f32.xlu0 %v1543_v39 }
 0xbe7   : > { %1426 = vmax.xlane.f32.xlu1 %v1425_v44 }
 0xbe9   : > { %1423 = vmax.xlane.f32.xlu0 %v1422_v41 }
 0xbed   : > { %1429 = vmax.xlane.f32.xlu0 %v1428_v50 }
 0xc6a   : > { %v1536_v43 = vpop.xlane.xlu0 %1535 }
 0xc6b   : > { %v1546_v63 = vsub.f32 %v1520_v13, %v1536_v43 }
 0xc6c   : > { %v1539_v51 = vpop.xlane.xlu1 %1538 }
 0xc6d   : > { %v1550_v3 = vmul.f32 1.442695, %v1546_v63  ;;  %v1547_v4 = vsub.f32 %v1523_v24, %v1539_v51 }
 0xc6e   : > { %v1542_v52 = vpop.xlane.xlu0 %1541 }
 0xc6f   : > { %v1548_v58 = vsub.f32 %v1528_v22, %v1542_v52  ;;  %v1552_v32 = vmul.f32 1.442695, %v1547_v4 }
 0xc70   : > { %v1421_v54 = vpop.xlane.xlu1 %1420 }
 0xc71   : > { %v1431_v49 = vsub.f32 %v1405_v28, %v1421_v54  ;;  %v1554_v15 = vmul.f32 1.442695, %v1548_v58 }
 0xc72   : > { %v1545_v55 = vpop.xlane.xlu0 %1544 }
 0xc73   : > { %v1435_v14 = vmul.f32 1.442695, %v1431_v49  ;;  %v1549_v0 = vsub.f32 %v1531_v30, %v1545_v55 }
 0xc74   : > { %v1427_v56 = vpop.xlane.xlu1 %1426 }
 0xc75   : > { %v1433_v57 = vsub.f32 %v1413_v33, %v1427_v56  ;;  %v1556_v5 = vmul.f32 1.442695, %v1549_v0 }
 0xc76   : > { %v1424_v59 = vpop.xlane.xlu0 %1423 }
 0xc77   : > { %v1439_v61 = vmul.f32 1.442695, %v1433_v57  ;;  %v1432_v48 = vsub.f32 %v1408_v38, %v1424_v59 }
 0xc79   : > { %2672 = vpow2.f32 %v1439_v61  ;;  %v1437_v1 = vmul.f32 1.442695, %v1432_v48 }
 0xc7a   : > { %v1430_v62 = vpop.xlane.xlu0 %1429  ;;  %2674 = vpow2.f32 %v1435_v14 }
 0xc7b   : > { %v1434_v17 = vsub.f32 %v1416_v40, %v1430_v62  ;;  %2676 = vpow2.f32 %v1554_v15 }
 0xc7d   : > { %v1441_v19 = vmul.f32 1.442695, %v1434_v17 }
 0xc7f   : > { %2678 = vpow2.f32 %v1441_v19 }
 0xc80   : > { %2680 = vpow2.f32 %v1437_v1 }
 0xc81   : > { %2682 = vpow2.f32 %v1550_v3  ;;  %v3132_v3 = vld [vmem:[%s3237_s6 + $0x8] sm:$0xff] }
 0xc82   : > { %2684 = vpow2.f32 %v1556_v5 }
 0xc83   : > { %v3101_v26 = vpop.eup %2672  ;;  %2686 = vpow2.f32 %v1552_v32 }
 0xc84   : > { %v1449_v6 = vsel %vm497_vm0, %v3101_v26, 0.0  ;;  %v2675_v7 = vpop.eup %2674 }
 0xc85   : > { %1450 = vadd.xlane.f32.xlu1 %v1449_v6  ;;  %v2677_v8 = vpop.eup %2676  ;;  %v1443_v9 = vsel %vm497_vm0, %v2675_v7, 0.0 }
 0xc86   : > { %v1564_v13 = vsel %vm497_vm0, %v2677_v8, 0.0 }
 0xc89   : > { %v3106_v10 = vpop.eup %2678  ;;  %1444 = vadd.xlane.f32.xlu1 %v1443_v9 }
 0xc8a   : > { %v1452_v11 = vsel %vm497_vm0, %v3106_v10, 0.0  ;;  %v2681_v12 = vpop.eup %2680 }
 0xc8b   : > { %1453 = vadd.xlane.f32.xlu0 %v1452_v11  ;;  %v2683_v18 = vpop.eup %2682  ;;  %v1446_v20 = vsel %vm497_vm0, %v2681_v12, 0.0 }
 0xc8c   : > { %v2685_v22 = vpop.eup %2684  ;;  %v1558_v24 = vsel %vm497_vm0, %v2683_v18, 0.0 }
 0xc8d   : > { %1565 = vadd.xlane.f32.xlu1 %v1564_v13  ;;  %v1567_v27 = vsel %vm497_vm0, %v2685_v22, 0.0  ;;  %v2687_v28 = vpop.eup %2686 }
 0xc8e   : > { %v1561_v29 = vsel %vm497_vm0, %v2687_v28, 0.0 }
 0xc8f   : > { %1447 = vadd.xlane.f32.xlu0 %v1446_v20 }
 0xc91   : > { %1559 = vadd.xlane.f32.xlu1 %v1558_v24 }
 0xc93   : > { %1568 = vadd.xlane.f32.xlu0 %v1567_v27 }
 0xc97   : > { %1562 = vadd.xlane.f32.xlu0 %v1561_v29 }
 0xca2   : > { %1582 = vrot.lane.b32.xlu1 %v3063_v60, %s2731_s24 }
 0xcad   : > { %1584 = vrot.lane.b32.xlu0 %v3068_v16, %s2731_s24 }
 0xd12   : > { %v1451_v30 = vpop.xlane.xlu1 %1450 }
 0xd16   : > { %v1445_v31 = vpop.xlane.xlu1 %1444 }
 0xd17   : > { %2688 = vrcp.f32 %v1445_v31 }
 0xd18   : > { %v1454_v33 = vpop.xlane.xlu0 %1453 }
 0xd1a   : > { %v1566_v37 = vpop.xlane.xlu1 %1565 }
 0xd1c   : > { %v1448_v38 = vpop.xlane.xlu0 %1447 }
 0xd1d   : > { %2690 = vrcp.f32 %v1448_v38 }
 0xd1e   : > { %v1560_v39 = vpop.xlane.xlu1 %1559 }
 0xd20   : > { %v1569_v44 = vpop.xlane.xlu0 %1568 }
 0xd21   : > { %2692 = vrcp.f32 %v1569_v44  ;;  %v2689_v43 = vpop.eup %2688 }
 0xd22   : > { %v1583_v40 = vpop.permute.xlu1 %1582  ;;  %2694 = vrcp.f32 %v1560_v39  ;;  %v1459_v48 = vmul.f32 %v2689_v43, %v2675_v7 }
 0xd23   : > { %2500 = vmatprep.subr.bf16.mxu0 %v1583_v40  ;;  %2696 = vrcp.f32 %v1566_v37 }
 0xd24   : > { %2501 = vmatpush3.bf16.msra.mxu0 %v1583_v40  ;;  %v1563_v41 = vpop.xlane.xlu0 %1562 }
 0xd25   : > { %2698 = vrcp.f32 %v1563_v41 }
 0xd26   : > { %2700 = vrcp.f32 %v1454_v33 }
 0xd27   : > { %v2691_v51 = vpop.eup %2690  ;;  %2702 = vrcp.f32 %v1451_v30 }
 0xd28   : > { %v1585_v50 = vpop.permute.xlu0 %1584  ;;  %v1460_v59 = vmul.f32 %v2691_v51, %v2681_v12  ;;  %v2612_v51 = vld [vmem:[%s3235_s4 + $0x10] sm:$0xff]  }
 0xd29   : > { %2502 = vmatprep.subr.bf16.mxu0 %v1585_v50  ;;  %2516 = vmatprep.subr.bf16.mxu1 %v2612_v51 }
 0xd2a   : > { %2503 = vmatpush3.bf16.msra.mxu0 %v1585_v50  ;;  %v1463_v62 = vpack.c.bf16 %v1460_v59, %v1459_v48  ;;  %2517 = vmatpush3.bf16.msra.mxu1 %v2612_v51 }
 0xd2b   : > { %2508 = vmatprep.subr.bf16.mxu0 %v3063_v60  ;;  %v2693_v52 = vpop.eup %2692 }
 0xd2c   : > { %v2695_v54 = vpop.eup %2694  ;;  %v1577_v56 = vmul.f32 %v2693_v52, %v2685_v22  ;;  %v2613_v52 = vld [vmem:[%s3235_s4 + $0x18] sm:$0xff]  }
 0xd2d   : > { %v2697_v55 = vpop.eup %2696  ;;  %v1574_v57 = vmul.f32 %v2695_v54, %v2683_v18  ;;  %2518 = vmatprep.subr.bf16.mxu1 %v2613_v52  ;;  %v2614_v54 = vld [vmem:[%s3236_s5 + $0x40] sm:$0xff]  }
 0xd2e   : > { %v1576_v14 = vmul.f32 %v2697_v55, %v2677_v8  ;;  %2519 = vmatpush3.bf16.msra.mxu1 %v2613_v52  ;;  %v2615_v55 = vld [vmem:[%s3236_s5 + $0x48] sm:$0xff]  }
 0xd2f   : > { %v2699_v49 = vpop.eup %2698 }
 0xd30   : > { %v1575_v58 = vmul.f32 %v2699_v49, %v2687_v28  ;;  %v1579_v15 = vpack.c.bf16 %v1577_v56, %v1576_v14  ;;  %v2701_v63 = vpop.eup %2700  ;;  %v2616_v49 = vld [vmem:[%s3236_s5 + $0x50] sm:$0xff]   ;;  %v2617_v56 = vld [vmem:[%s3236_s5 + $0x58] sm:$0xff]  }
 0xd31   : > { %v2703_v17 = vpop.eup %2702  ;;  %v1462_v0 = vmul.f32 %v2701_v63, %v3106_v10 }
 0xd32   : > { %v1578_v61 = vpack.c.bf16 %v1575_v58, %v1574_v57  ;;  %v1461_v1 = vmul.f32 %v2703_v17, %v3101_v26  ;;  %v2618_v57 = vld [vmem:[%s3236_s5 + $0x60] sm:$0xff]   ;;  %v2619_v58 = vld [vmem:[%s3236_s5 + $0x68] sm:$0xff]  }
 0xd34   : > { %2504 = vmatprep.mubr.msk.bf16.mxu0 %vm497_vm0, %v1578_v61  ;;  %v1464_v19 = vpack.c.bf16 %v1462_v0, %v1461_v1 }
 0xd35   : > { %2505 = vmatmul.mubr.msk.bf16.vlgmr.msra.gmra.mrb[12].mxu0 %vm497_vm0, %v1579_v15 }
 0xd36   : > { %2509 = vmatpush3.bf16.msra.mxu0 %v3063_v60  ;;  %2512 = vmatprep.mubr.msk.bf16.mxu0 %vm497_vm0, %v1463_v62  ;;  %v1701_v60 = vrot.slane %v3132_v3, %v909_v35 }
 0xd37   : > { %2510 = vmatprep.subr.bf16.mxu0 %v3068_v16 }
 0xd3a   : > { %2511 = vmatpush3.bf16.msra.mxu0 %v3068_v16 }
 0xd3b   : > { %2524 = vmatprep.subr.bf16.mxu0 %v2614_v54 }
 0xd41   : > { %2513 = vmatmul.mubr.msk.bf16.vlgmr.msra.gmra.mrb[12].mxu0 %vm497_vm0, %v1464_v19 }
 0xd42   : > { %2525 = vmatpush3.bf16.msra.mxu0 %v2614_v54 }
 0xd43   : > { %2526 = vmatprep.subr.bf16.mxu0 %v2615_v55 }
 0xd46   : > { %2527 = vmatpush3.bf16.msra.mxu0 %v2615_v55 }
 0xd47   : > { %2528 = vmatprep.subr.bf16.mxu0 %v2616_v49 }
 0xd4a   : > { %2529 = vmatpush3.bf16.msra.mxu0 %v2616_v49 }
 0xd4b   : > { %2530 = vmatprep.subr.bf16.mxu0 %v2617_v56 }
 0xd4e   : > { %2531 = vmatpush3.bf16.msra.mxu0 %v2617_v56 }
 0xd4f   : > { %2532 = vmatprep.subr.bf16.mxu0 %v2618_v57 }
 0xd52   : > { %2533 = vmatpush3.bf16.msra.mxu0 %v2618_v57 }
 0xd53   : > { %2534 = vmatprep.subr.bf16.mxu0 %v2619_v58 }
 0xd56   : > { %2535 = vmatpush3.bf16.msra.mxu0 %v2619_v58 }
 0xe14   : > { %v2514_v4 = vpop.f32.mrb[12].mxu0 }
 0xe15   : > { %v1683_v5 = vpop.f32.mrb[13].mxu0  ;;  %v1704_v6 = vadd.f32 %v2514_v4, %v1701_v60  ;;  %v1765_v4 = vrot.slane %v3132_v3, %v974_v42 }
 0xe16   : > { %v1702_v16 = vadd.f32 %v1701_v60, %v1683_v5  ;;  %v2515_v7 = vpop.f32.mrb[14].mxu0 }
 0xe17   : > { %v1686_v32 = vpop.f32.mrb[15].mxu0  ;;  %v1705_v8 = vadd.f32 %v2515_v7, %v1701_v60  ;;  %v1708_v12 = vadd.f32 %v1704_v6, %v3058_v36 }
 0xe18   : > { %v1703_v26 = vadd.f32 %v1701_v60, %v1686_v32  ;;  %v1706_v9 = vadd.f32 %v1702_v16, %v3048_v45 }
 0xe19   : > { %v1709_v35 = vadd.f32 %v1705_v8, %v3056_v53  ;;  %v1716_v18 = vsel %vm497_vm0, %v1708_v12, 0.0  ;;  %v1773_v8 = vrot.slane %v3132_v3, %v982_v46  ;;  %v2620_v46 = vld [vmem:[%s3236_s5 + $0x70] sm:$0xff]  }
 0xe1a   : > { %v1710_v10 = vsel %vm497_vm0, %v1706_v9, 0.0  ;;  %v1707_v11 = vadd.f32 %v1703_v26, %v3050_v47  ;;  %2536 = vmatprep.subr.bf16.mxu0 %v2620_v46 }
 0xe1b   : > { %1711 = vadd.xlane.f32.xlu1 %v1710_v10  ;;  %v1719_v20 = vsel %vm497_vm0, %v1709_v35, 0.0  ;;  %2537 = vmatpush3.bf16.msra.mxu0 %v2620_v46 }
 0xe1c   : > { %v1713_v13 = vsel %vm497_vm0, %v1707_v11, 0.0 }
 0xe1d   : > { %1714 = vadd.xlane.f32.xlu0 %v1713_v13 }
 0xe1f   : > { %1717 = vadd.xlane.f32.xlu1 %v1716_v18 }
 0xe21   : > { %1720 = vadd.xlane.f32.xlu0 %v1719_v20 }
 0xea8   : > { %v1712_v22 = vpop.xlane.xlu1 %1711 }
 0xea9   : > { %v1722_v45 = vmul.f32 0.03125, %v1712_v22 }
 0xeaa   : > { %v1715_v24 = vpop.xlane.xlu0 %1714 }
 0xeab   : > { %v3145_v27 = vsub.f32 %v1706_v9, %v1722_v45  ;;  %v1723_v47 = vmul.f32 0.03125, %v1715_v24 }
 0xeac   : > { %v1718_v28 = vpop.xlane.xlu1 %1717 }
 0xead   : > { %v1727_v36 = vsub.f32 %v1707_v11, %v1723_v47  ;;  %v1724_v29 = vmul.f32 0.03125, %v1718_v28  ;;  %v1730_v30 = vmul.f32 %v3145_v27, %v3145_v27  ;;  %v1788_v47 = vrot.slane %v3132_v3, %v996_v2 }
 0xeae   : > { %v1721_v53 = vpop.xlane.xlu0 %1720  ;;  %v1882_v2 = vrot.slane %v3132_v3, %v1089_v21 }
 0xeaf   : > { %v1728_v31 = vsub.f32 %v1708_v12, %v1724_v29  ;;  %v1725_v33 = vmul.f32 0.03125, %v1721_v53  ;;  %v1734_v37 = vsel %vm497_vm0, %v1730_v30, 0.0  ;;  %v1731_v38 = vmul.f32 %v1727_v36, %v1727_v36 }
 0xeb0   : > { %1735 = vadd.xlane.f32.xlu1 %v1734_v37 }
 0xeb1   : > { %v1729_v39 = vsub.f32 %v1709_v35, %v1725_v33  ;;  %v1737_v44 = vsel %vm497_vm0, %v1731_v38, 0.0  ;;  %v1732_v40 = vmul.f32 %v1728_v31, %v1728_v31 }
 0xeb2   : > { %1738 = vadd.xlane.f32.xlu0 %v1737_v44 }
 0xeb3   : > { %v1740_v41 = vsel %vm497_vm0, %v1732_v40, 0.0  ;;  %v1733_v50 = vmul.f32 %v1729_v39, %v1729_v39 }
 0xeb4   : > { %1741 = vadd.xlane.f32.xlu1 %v1740_v41 }
 0xeb5   : > { %v1743_v43 = vsel %vm497_vm0, %v1733_v50, 0.0 }
 0xeb6   : > { %1744 = vadd.xlane.f32.xlu0 %v1743_v43 }
 0xf3d   : > { %v1736_v59 = vpop.xlane.xlu1 %1735 }
 0xf3e   : > { %v1746_v14 = vmul.f32 0.03125, %v1736_v59 }
 0xf3f   : > { %v1739_v61 = vpop.xlane.xlu0 %1738 }
 0xf40   : > { %v1750_v48 = vadd.f32 1e-05, %v1746_v14  ;;  %v1747_v15 = vmul.f32 0.03125, %v1739_v61 }
 0xf41   : > { %v1742_v62 = vpop.xlane.xlu1 %1741 }
 0xf42   : > { %2704 = vrsqrt.f32 %v1750_v48  ;;  %v1751_v63 = vadd.f32 1e-05, %v1747_v15  ;;  %v1748_v17 = vmul.f32 0.03125, %v1742_v62 }
 0xf43   : > { %v1745_v0 = vpop.xlane.xlu0 %1744 }
 0xf44   : > { %2706 = vrsqrt.f32 %v1751_v63  ;;  %v1752_v1 = vadd.f32 1e-05, %v1748_v17  ;;  %v1749_v19 = vmul.f32 0.03125, %v1745_v0 }
 0xf46   : > { %2708 = vrsqrt.f32 %v1752_v1  ;;  %v1753_v60 = vadd.f32 1e-05, %v1749_v19 }
 0xf48   : > { %2710 = vrsqrt.f32 %v1753_v60 }
 0xf4c   : > { %v2705_v5 = vpop.eup %2704 }
 0xf4d   : > { %v1758_v6 = vmul.f32 %v2705_v5, %v3145_v27  ;;  %v2621_v27 = vld [vmem:[%s3236_s5 + $0x78] sm:$0xff]  }
 0xf4e   : > { %v2707_v16 = vpop.eup %2706  ;;  %2538 = vmatprep.subr.bf16.mxu0 %v2621_v27 }
 0xf4f   : > { %v1759_v7 = vmul.f32 %v2707_v16, %v1727_v36  ;;  %v1766_v32 = vmul.f32 %v1765_v4, %v1758_v6  ;;  %2539 = vmatpush3.bf16.msra.mxu0 %v2621_v27 }
 0xf50   : > { %v2709_v26 = vpop.eup %2708 }
 0xf51   : > { %v1760_v9 = vmul.f32 %v2709_v26, %v1728_v31  ;;  %v1767_v10 = vmul.f32 %v1765_v4, %v1759_v7  ;;  %v1774_v35 = vadd.f32 %v1773_v8, %v1766_v32 }
 0xf52   : > { %v2711_v11 = vpop.eup %2710 }
 0xf53   : > { %v1768_v12 = vmul.f32 %v1765_v4, %v1760_v9  ;;  %v1761_v13 = vmul.f32 %v2711_v11, %v1729_v39  ;;  %v1775_v18 = vadd.f32 %v1773_v8, %v1767_v10 }
 0xf55   : > { %v1769_v20 = vmul.f32 %v1765_v4, %v1761_v13  ;;  %v1778_v42 = vpack.c.bf16 %v1775_v18, %v1774_v35  ;;  %v1776_v22 = vadd.f32 %v1773_v8, %v1768_v12 }
 0xf57   : > { %2520 = vmatprep.mubr.msk.bf16.mxu1 %vm497_vm0, %v1778_v42  ;;  %v1777_v45 = vadd.f32 %v1773_v8, %v1769_v20  ;;  %v2623_v20 = vld [vmem:[%s3238_s7 + $0x8] sm:$0xff]  }
 0xf59   : > { %v1779_v24 = vpack.c.bf16 %v1777_v45, %v1776_v22 }
 0xf5b   : > { %2521 = vmatmul.mubr.msk.bf16.vlgmr.msra.gmra.mrb[40].mxu1 %vm497_vm0, %v1779_v24 }
0x102e   : > { %v2522_v28 = vpop.f32.mrb[40].mxu1 }
0x102f   : > { %v1850_v36 = vadd.f32 %v2522_v28, %v1788_v47  ;;  %v1841_v29 = vpop.f32.mrb[41].mxu1 }
0x1030   : > { %v1842_v30 = vadd.f32 %v1841_v29, %v1788_v47  ;;  %v2523_v53 = vpop.f32.mrb[42].mxu1 }
0x1031   : > { %v1853_v31 = vadd.f32 %v2523_v53, %v1788_v47  ;;  %v1844_v33 = vpop.f32.mrb[43].mxu1  ;;  %v1858_v38 = vmax.f32 %v1850_v36, 0.0 }
0x1032   : > { %v1845_v37 = vadd.f32 %v1844_v33, %v1788_v47  ;;  %v1856_v44 = vmax.f32 %v1842_v30, 0.0 }
0x1033   : > { %v1859_v39 = vmax.f32 %v1853_v31, 0.0  ;;  %v2039_v31 = vrot.slane %v3132_v3, %v1246_v23 }
0x1034   : > { %v1857_v40 = vmax.f32 %v1845_v37, 0.0 }
0x1035   : > { %v1861_v41 = vpack.c.bf16 %v1859_v39, %v1858_v38 }
0x1036   : > { %v1860_v50 = vpack.c.bf16 %v1857_v40, %v1856_v44  ;;  %v2047_v40 = vrot.slane %v3132_v3, %v1254_v25  ;;  %v2304_v25 = vld [vmem:[%s3239_s8] ss:$0 sm:$0xff] }
0x1038   : > { %2540 = vmatprep.mubr.bf16.mxu0 %v1860_v50 }
0x1039   : > { %2541 = vmatmul.mubr.bf16.vlgmr.msra.gmra.mrb[16].mxu0 %v1861_v41 }
0x110c   : > { %v2542_v43 = vpop.f32.mrb[16].mxu0 }
0x110d   : > { %v1965_v51 = vpop.f32.mrb[17].mxu0  ;;  %v1974_v52 = vadd.f32 %v2542_v43, %v1882_v2 }
0x110e   : > { %v1966_v54 = vadd.f32 %v1965_v51, %v1882_v2  ;;  %v2543_v55 = vpop.f32.mrb[18].mxu0 }
0x110f   : > { %v1968_v49 = vpop.f32.mrb[19].mxu0  ;;  %v1977_v56 = vadd.f32 %v2543_v55, %v1882_v2  ;;  %v1982_v61 = vadd.f32 %v1974_v52, %v1776_v22 }
0x1110   : > { %v1969_v57 = vadd.f32 %v1968_v49, %v1882_v2  ;;  %v1980_v58 = vadd.f32 %v1966_v54, %v1774_v35 }
0x1111   : > { %v1983_v15 = vadd.f32 %v1977_v56, %v1777_v45  ;;  %v1990_v21 = vsel %vm497_vm0, %v1982_v61, 0.0 }
0x1112   : > { %v1984_v59 = vsel %vm497_vm0, %v1980_v58, 0.0  ;;  %v1981_v14 = vadd.f32 %v1969_v57, %v1775_v18  ;;  %v2622_v18 = vld [vmem:[%s3238_s7] sm:$0xff]  }
0x1113   : > { %1985 = vadd.xlane.f32.xlu1 %v1984_v59  ;;  %v1993_v62 = vsel %vm497_vm0, %v1983_v15, 0.0  ;;  %2544 = vmatprep.subr.bf16.mxu1 %v2622_v18 }
0x1114   : > { %v1987_v48 = vsel %vm497_vm0, %v1981_v14, 0.0  ;;  %2545 = vmatpush3.bf16.msra.mxu1 %v2622_v18 }
0x1115   : > { %1988 = vadd.xlane.f32.xlu0 %v1987_v48  ;;  %2546 = vmatprep.subr.bf16.mxu1 %v2623_v20 }
0x1117   : > { %1991 = vadd.xlane.f32.xlu1 %v1990_v21 }
0x1118   : > { %2547 = vmatpush3.bf16.msra.mxu1 %v2623_v20 }
0x1119   : > { %1994 = vadd.xlane.f32.xlu0 %v1993_v62 }
0x11a0   : > { %v1986_v63 = vpop.xlane.xlu1 %1985 }
0x11a1   : > { %v1996_v17 = vmul.f32 0.03125, %v1986_v63 }
0x11a2   : > { %v1989_v0 = vpop.xlane.xlu0 %1988 }
0x11a3   : > { %v2000_v1 = vsub.f32 %v1980_v58, %v1996_v17  ;;  %v1997_v19 = vmul.f32 0.03125, %v1989_v0 }
0x11a4   : > { %v1992_v60 = vpop.xlane.xlu1 %1991 }
0x11a5   : > { %v2001_v4 = vsub.f32 %v1981_v14, %v1997_v19  ;;  %v1998_v5 = vmul.f32 0.03125, %v1992_v60  ;;  %v2004_v6 = vmul.f32 %v2000_v1, %v2000_v1 }
0x11a6   : > { %v1995_v16 = vpop.xlane.xlu0 %1994 }
0x11a7   : > { %v2002_v7 = vsub.f32 %v1982_v61, %v1998_v5  ;;  %v1999_v32 = vmul.f32 0.03125, %v1995_v16  ;;  %v2008_v8 = vsel %vm497_vm0, %v2004_v6, 0.0  ;;  %v2005_v26 = vmul.f32 %v2001_v4, %v2001_v4 }
0x11a8   : > { %2009 = vadd.xlane.f32.xlu1 %v2008_v8 }
0x11a9   : > { %v2003_v9 = vsub.f32 %v1983_v15, %v1999_v32  ;;  %v2011_v10 = vsel %vm497_vm0, %v2005_v26, 0.0  ;;  %v2006_v11 = vmul.f32 %v2002_v7, %v2002_v7 }
0x11aa   : > { %2012 = vadd.xlane.f32.xlu0 %v2011_v10 }
0x11ab   : > { %v2014_v12 = vsel %vm497_vm0, %v2006_v11, 0.0  ;;  %v2007_v13 = vmul.f32 %v2003_v9, %v2003_v9 }
0x11ac   : > { %2015 = vadd.xlane.f32.xlu1 %v2014_v12 }
0x11ad   : > { %v2017_v35 = vsel %vm497_vm0, %v2007_v13, 0.0 }
0x11ae   : > { %2018 = vadd.xlane.f32.xlu0 %v2017_v35 }
0x1235   : > { %v2010_v42 = vpop.xlane.xlu1 %2009 }
0x1236   : > { %v2020_v22 = vmul.f32 0.03125, %v2010_v42 }
0x1237   : > { %v2013_v45 = vpop.xlane.xlu0 %2012 }
0x1238   : > { %v2024_v24 = vadd.f32 1e-05, %v2020_v22  ;;  %v2021_v46 = vmul.f32 0.03125, %v2013_v45 }
0x1239   : > { %v2016_v27 = vpop.xlane.xlu1 %2015 }
0x123a   : > { %2712 = vrsqrt.f32 %v2024_v24  ;;  %v2025_v47 = vadd.f32 1e-05, %v2021_v46  ;;  %v2022_v28 = vmul.f32 0.03125, %v2016_v27 }
0x123b   : > { %v2019_v36 = vpop.xlane.xlu0 %2018 }
0x123c   : > { %2714 = vrsqrt.f32 %v2025_v47  ;;  %v2026_v29 = vadd.f32 1e-05, %v2022_v28  ;;  %v2023_v30 = vmul.f32 0.03125, %v2019_v36 }
0x123e   : > { %2716 = vrsqrt.f32 %v2026_v29  ;;  %v2027_v53 = vadd.f32 1e-05, %v2023_v30 }
0x1240   : > { %2718 = vrsqrt.f32 %v2027_v53 }
0x1244   : > { %v2713_v33 = vpop.eup %2712 }
0x1245   : > { %v2032_v37 = vmul.f32 %v2713_v33, %v2000_v1 }
0x1246   : > { %v2715_v38 = vpop.eup %2714 }
0x1247   : > { %v2033_v39 = vmul.f32 %v2715_v38, %v2001_v4  ;;  %v2040_v44 = vmul.f32 %v2039_v31, %v2032_v37 }
0x1248   : > { %v2717_v41 = vpop.eup %2716 }
0x1249   : > { %v2034_v50 = vmul.f32 %v2717_v41, %v2002_v7  ;;  %v2041_v2 = vmul.f32 %v2039_v31, %v2033_v39  ;;  %v2048_v54 = vadd.f32 %v2047_v40, %v2040_v44 }
0x124a   : > { %v2719_v43 = vpop.eup %2718 }
0x124b   : > { %v2042_v51 = vmul.f32 %v2039_v31, %v2034_v50  ;;  %v2035_v52 = vmul.f32 %v2719_v43, %v2003_v9  ;;  %v2049_v55 = vadd.f32 %v2047_v40, %v2041_v2 }
0x124d   : > { %v2043_v49 = vmul.f32 %v2039_v31, %v2035_v52  ;;  %v2052_v56 = vpack.c.bf16 %v2049_v55, %v2048_v54  ;;  %v2050_v23 = vadd.f32 %v2047_v40, %v2042_v51 }
0x124f   : > { %2548 = vmatprep.mubr.msk.bf16.mxu1 %vm497_vm0, %v2052_v56  ;;  %v2051_v57 = vadd.f32 %v2047_v40, %v2043_v49 }
0x1251   : > { %v2053_v58 = vpack.c.bf16 %v2051_v57, %v2050_v23 }
0x1253   : > { %2549 = vmatmul.mubr.msk.bf16.vlgmr.msra.gmra.mrb[44].mxu1 %vm497_vm0, %v2053_v58 }
0x1326   : > { %v2550_v34 = vpop.f32.mrb[44].mxu1 }
0x1327   : > { %v2117_v3 = vpop.f32.mrb[45].mxu1  ;;  %v2126_v14 = vadd.f32 %v2550_v34, %v2304_v25 }
0x1328   : > { %v2551_v59 = vpop.f32.mrb[46].mxu1  ;;  %v2118_v15 = vadd.f32 %v2304_v25, %v2117_v3 }
0x1329   : > { %v2129_v61 = vadd.f32 %v2551_v59, %v2304_v25  ;;  %v2120_v48 = vpop.f32.mrb[47].mxu1 }
0x132a   : > { %v2121_v21 = vadd.f32 %v2304_v25, %v2120_v48 }
0x132b   : > { %v2327_v62 = vpack.c.bf16 %v2129_v61, %v2126_v14 }
0x132c   : > { %v2322_v63 = vpack.c.bf16 %v2121_v21, %v2118_v15 }
0x132d   : > { %2329 = vst [vmem:[%s334_s27 + $0x8] sm:$0xff] %v2327_v62  }
0x132e   : > { %2323 = vst [vmem:[%s334_s27] sm:$0xff] %v2322_v63  }
0x132f PF: > { %s19_s30 = sadd.s32 1, %s2726_s30  }
0x1330   : > { %p16_p4 = scmp.ge.s32.totalorder %s19_s30, 4  }
0x1332   :  { %18 = sbr.rel (!%p16_p4) target bundleno = 1 (0x1), region = 90 }

</bundles_post_ra>
